<compile_context>
chip_gen: v7x
topology: tpu7x:2x2x1
jax: 0.10.0
libtpu: 0.0.40
codegen_flags: <defaults>
</compile_context>

<pallas_src>
import functools

import jax
import jax.numpy as jnp
from jax import lax
from jax.experimental import pallas as pl
from jax.experimental.pallas import tpu as pltpu

COUT_PAD = 128          # lane-dense channel padding for all conv outputs / fc input
VMEM_LIMIT = 32 * 1024 * 1024


# ---------------------------------------------------------------------------
# Fused conv3x3 / stride 2 / pad 1 / relu kernel (one image per grid step)
# ---------------------------------------------------------------------------
def _conv3x3_s2_kernel(xe_ref, xo_ref, w_ref, b_ref, o_ref):
    # xe_ref/xo_ref: (Hp, Wo+1, Cin)  column-parity planes of the padded input (bf16)
    # w_ref:         (9, Cin, 128)    per-tap GEMM weights (bf16, zero padded)
    # b_ref:         (1, 128)         bias (f32, zero padded)
    # o_ref:         (Ho, Wo, 128)    output (bf16), lane-dense last dim
    ho, wo, co = o_ref.shape
    bias = b_ref[...]                                    # (1, co) f32

    def row_body(oh, carry):
        acc = jnp.zeros((wo, co), jnp.float32)
        for kh in range(3):
            row = 2 * oh + kh                            # padded-input row for this tap
            for kw in range(3):
                src = xe_ref if (kw % 2 == 0) else xo_ref
                tap = src[row, pl.ds(kw // 2, wo), :]    # (wo, cin) contiguous slice
                acc = acc + jnp.dot(tap, w_ref[kh * 3 + kw],
                                    preferred_element_type=jnp.float32)
        o_ref[oh] = jnp.maximum(acc + bias, 0.0).astype(o_ref.dtype)
        return carry

    lax.fori_loop(0, ho, row_body, 0)


def _conv3x3_s2_relu(x, w9, b):
    # x: (N, H, W, Cin) bf16 -> (N, Ho, Wo, 128) bf16
    n, h, w, cin = x.shape
    ho, wo = (h + 1) // 2, (w + 1) // 2
    hp = h + 2
    # pad H by 1/1; pad W on the right so both column-parity planes have width wo+1
    xp = jnp.pad(x, ((0, 0), (1, 1), (1, 2 * wo + 1 - w), (0, 0)))
    xe = xp[:, :, 0::2, :]                               # (N, hp, wo+1, cin)
    xo = xp[:, :, 1::2, :]                               # (N, hp, wo+1, cin)
    wpar = wo + 1

    return pl.pallas_call(
        _conv3x3_s2_kernel,
        out_shape=jax.ShapeDtypeStruct((n, ho, wo, COUT_PAD), jnp.bfloat16),
        grid=(n,),
        in_specs=[
            pl.BlockSpec((None, hp, wpar, cin), lambda i: (i, 0, 0, 0)),
            pl.BlockSpec((None, hp, wpar, cin), lambda i: (i, 0, 0, 0)),
            pl.BlockSpec((9, cin, COUT_PAD), lambda i: (0, 0, 0)),   # resident
            pl.BlockSpec((1, COUT_PAD), lambda i: (0, 0)),           # resident
        ],
        out_specs=pl.BlockSpec((None, ho, wo, COUT_PAD), lambda i: (i, 0, 0, 0)),
        compiler_params=pltpu.CompilerParams(
            dimension_semantics=("parallel",),
            vmem_limit_bytes=VMEM_LIMIT),
    )(xe, xo, w9, b)


# ---------------------------------------------------------------------------
# Fused global-average-pool + fc kernel (tiled over spatial axis, resident acc)
# ---------------------------------------------------------------------------
def _pool_fc_kernel(f_ref, w_ref, b_ref, o_ref, acc_ref, *, hw_total):
    # f_ref: (N, t_hw, C) bf16 ; w_ref: (C, O_pad) f32 ; b_ref: (1, O_pad) f32
    # o_ref: (N, O_pad) f32   ; acc_ref: (N, C) f32 scratch (resident across grid)
    j = pl.program_id(0)
    t_hw = f_ref.shape[1]

    @pl.when(j == 0)
    def _():
        acc_ref[...] = jnp.zeros_like(acc_ref)

    f = f_ref[...].astype(jnp.float32)
    pos = lax.broadcasted_iota(jnp.int32, f.shape, 1) + j * t_hw
    f = jnp.where(pos < hw_total, f, 0.0)                # mask partial last tile
    acc_ref[...] += jnp.sum(f, axis=1)

    @pl.when(j == pl.num_programs(0) - 1)
    def _():
        pooled = acc_ref[...] * jnp.float32(1.0 / hw_total)
        o_ref[...] = jnp.dot(pooled, w_ref[...],
                             preferred_element_type=jnp.float32) + b_ref[...]


def _pool_fc(feats, w_fc, b_fc):
    n, hw, c = feats.shape
    o_pad = w_fc.shape[1]
    t_hw = hw if hw <= 512 else 512
    return pl.pallas_call(
        functools.partial(_pool_fc_kernel, hw_total=hw),
        out_shape=jax.ShapeDtypeStruct((n, o_pad), jnp.float32),
        grid=(pl.cdiv(hw, t_hw),),
        in_specs=[
            pl.BlockSpec((n, t_hw, c), lambda j: (0, j, 0)),
            pl.BlockSpec((c, o_pad), lambda j: (0, 0)),
            pl.BlockSpec((1, o_pad), lambda j: (0, 0)),
        ],
        out_specs=pl.BlockSpec((n, o_pad), lambda j: (0, 0)),
        scratch_shapes=[pltpu.VMEM((n, c), jnp.float32)],
        compiler_params=pltpu.CompilerParams(
            dimension_semantics=("arbitrary",),
            vmem_limit_bytes=VMEM_LIMIT),
    )(feats, w_fc, b_fc)


# ---------------------------------------------------------------------------
# Parameter prep (hoisted: done once, outside the per-step forward)
# ---------------------------------------------------------------------------
def _prep_conv(w, b, cin_pad):
    # PyTorch conv weight (Cout, Cin, 3, 3) -> (9, cin_pad, 128) bf16 (tap-major kh,kw)
    cout, cin, kh, kw = w.shape
    wt = jnp.transpose(w, (2, 3, 1, 0)).reshape(kh * kw, cin, cout)
    wt = jnp.pad(wt, ((0, 0), (0, cin_pad - cin), (0, COUT_PAD - cout)))
    bt = jnp.pad(b, (0, COUT_PAD - cout)).reshape(1, COUT_PAD)
    return wt.astype(jnp.bfloat16), bt.astype(jnp.float32)


def prepare_params(params, input_channels):
    w1, b1 = _prep_conv(params["w1"], params["b1"], input_channels)
    w2, b2 = _prep_conv(params["w2"], params["b2"], COUT_PAD)
    w3, b3 = _prep_conv(params["w3"], params["b3"], COUT_PAD)
    o, c_in = params["fc_w"].shape                       # PyTorch Linear layout (out, in)
    o_pad = ((o + 127) // 128) * 128
    fcw = jnp.pad(params["fc_w"].T.astype(jnp.float32),
                  ((0, COUT_PAD - c_in), (0, o_pad - o)))
    fcb = jnp.pad(params["fc_b"].astype(jnp.float32), (0, o_pad - o)).reshape(1, o_pad)
    return {"w1": w1, "b1": b1, "w2": w2, "b2": b2, "w3": w3, "b3": b3,
            "fc_w": fcw, "fc_b": fcb}


# ---------------------------------------------------------------------------
# FlexibleImageEncoder forward
# ---------------------------------------------------------------------------
@functools.partial(jax.jit, static_argnames=("output_size",))
def flexible_image_encoder(x_nchw, p, *, output_size):
    # NCHW (PyTorch) -> NHWC bf16 compute path; f32 accumulation / epilogues in-kernel.
    x = jnp.transpose(x_nchw, (0, 2, 3, 1)).astype(jnp.bfloat16)
    x = _conv3x3_s2_relu(x, p["w1"], p["b1"])            # (N, H/2, W/2, 128) [32 real ch]
    x = _conv3x3_s2_relu(x, p["w2"], p["b2"])            # (N, H/4, W/4, 128) [64 real ch]
    x = _conv3x3_s2_relu(x, p["w3"], p["b3"])            # (N, H/8, W/8, 128) [64 real ch]
    n, ho, wo, c = x.shape
    feats = x.reshape(n, ho * wo, c)
    out = _pool_fc(feats, p["fc_w"], p["fc_b"])          # (N, O_pad) f32
    return out[:, :output_size]


def init_params(key, input_channels, output_size):
    ks = jax.random.split(key, 8)

    def u(k, shape, fan_in):
        bound = 1.0 / jnp.sqrt(fan_in)
        return jax.random.uniform(k, shape, jnp.float32, -bound, bound)

    return {
        "w1": u(ks[0], (32, input_channels, 3, 3), 9 * input_channels),
        "b1": u(ks[1], (32,), 9 * input_channels),
        "w2": u(ks[2], (64, 32, 3, 3), 9 * 32),
        "b2": u(ks[3], (64,), 9 * 32),
        "w3": u(ks[4], (64, 64, 3, 3), 9 * 64),
        "b3": u(ks[5], (64,), 9 * 64),
        "fc_w": u(ks[6], (output_size, 64), 64),          # PyTorch Linear layout (out, in)
        "fc_b": u(ks[7], (output_size,), 64),
    }


if __name__ == "__main__":
    batch, in_ch, spatial, out_size = 2, 4, 16, 32

    key = jax.random.PRNGKey(0)
    k_x, k_p = jax.random.split(key)
    x = jax.random.normal(k_x, (batch, in_ch, spatial, spatial), jnp.float32)  # NCHW
    params = init_params(k_p, in_ch, out_size)
    prepped = prepare_params(params, in_ch)

    out = flexible_image_encoder(x, prepped, output_size=out_size)
    out = jax.block_until_ready(out)
    assert out.shape == (batch, out_size), out.shape
    print("KERNEL_OK")
</pallas_src>

<mosaic_0001>
module attributes {stable_mosaic.version = 11 : i64} {
  func.func @_conv3x3_s2_kernel(%arg0: i32, %arg1: memref<1x18x9x4xbf16, #tpu.memory_space<vmem>>, %arg2: memref<1x18x9x4xbf16, #tpu.memory_space<vmem>>, %arg3: memref<9x4x128xbf16, #tpu.memory_space<vmem>>, %arg4: memref<1x128xf32, #tpu.memory_space<vmem>>, %arg5: memref<1x8x8x128xbf16, #tpu.memory_space<vmem>>) attributes {dimension_semantics = [#tpu.dimension_semantics<parallel>], iteration_bounds = array<i64: 2>, scalar_prefetch = 0 : i64, scratch_operands = 0 : i64, tpu.core_type = #tpu.core_type<tc>, window_params = [{transform_indices = @transform_0, window_bounds = array<i64: 1, 18, 9, 4>}, {transform_indices = @transform_1, window_bounds = array<i64: 1, 18, 9, 4>}, {pipeline_mode = #tpu.pipeline_mode<synchronous>, transform_indices = @transform_2, window_bounds = array<i64: 9, 4, 128>}, {pipeline_mode = #tpu.pipeline_mode<synchronous>, transform_indices = @transform_3, window_bounds = array<i64: 1, 128>}, {transform_indices = @transform_4, window_bounds = array<i64: 1, 8, 8, 128>}]} {
    %c0 = arith.constant 0 : index
    %c0_0 = arith.constant 0 : index
    %0 = vector.load %arg4[%c0, %c0_0] : memref<1x128xf32, #tpu.memory_space<vmem>>, vector<1x128xf32>
    %c0_i32 = arith.constant 0 : i32
    %c8_i32 = arith.constant 8 : i32
    %1 = arith.addi %c0_i32, %c8_i32 : i32
    %c1_i32 = arith.constant 1 : i32
    scf.for %arg6 = %c0_i32 to %1 step %c1_i32  : i32 {
      %cst = arith.constant 0.000000e+00 : f32
      %2 = vector.broadcast %cst : f32 to vector<8x128xf32>
      %c2_i32 = arith.constant 2 : i32
      %3 = arith.muli %c2_i32, %arg6 : i32
      %c0_i32_2 = arith.constant 0 : i32
      %4 = arith.addi %3, %c0_i32_2 : i32
      %c0_3 = arith.constant 0 : index
      %5 = arith.index_cast %4 : i32 to index
      %c0_4 = arith.constant 0 : index
      %c0_5 = arith.constant 0 : index
      %6 = vector.load %arg1[%c0_3, %5, %c0_4, %c0_5] : memref<1x18x9x4xbf16, #tpu.memory_space<vmem>>, vector<1x1x8x4xbf16>
      %7 = vector.shape_cast %6 : vector<1x1x8x4xbf16> to vector<8x4xbf16>
      %c0_6 = arith.constant 0 : index
      %c0_7 = arith.constant 0 : index
      %c0_8 = arith.constant 0 : index
      %8 = vector.load %arg3[%c0_6, %c0_7, %c0_8] : memref<9x4x128xbf16, #tpu.memory_space<vmem>>, vector<1x4x128xbf16>
      %9 = vector.shape_cast %8 : vector<1x4x128xbf16> to vector<4x128xbf16>
      %cst_9 = arith.constant dense<0.000000e+00> : vector<8x128xf32>
      %10 = tpu.matmul %7, %9, %cst_9 {dimension_numbers = #tpu.dot_dimension_numbers<[1], [0], [0], [1], [0, 0, 1, 1], [], []>} : vector<8x4xbf16>, vector<4x128xbf16>, vector<8x128xf32> -> vector<8x128xf32>
      %11 = arith.addf %2, %10 : vector<8x128xf32>
      %c0_10 = arith.constant 0 : index
      %12 = arith.index_cast %4 : i32 to index
      %c0_11 = arith.constant 0 : index
      %c0_12 = arith.constant 0 : index
      %13 = vector.load %arg2[%c0_10, %12, %c0_11, %c0_12] : memref<1x18x9x4xbf16, #tpu.memory_space<vmem>>, vector<1x1x8x4xbf16>
      %14 = vector.shape_cast %13 : vector<1x1x8x4xbf16> to vector<8x4xbf16>
      %c1 = arith.constant 1 : index
      %c0_13 = arith.constant 0 : index
      %c0_14 = arith.constant 0 : index
      %15 = vector.load %arg3[%c1, %c0_13, %c0_14] : memref<9x4x128xbf16, #tpu.memory_space<vmem>>, vector<1x4x128xbf16>
      %16 = vector.shape_cast %15 : vector<1x4x128xbf16> to vector<4x128xbf16>
      %cst_15 = arith.constant dense<0.000000e+00> : vector<8x128xf32>
      %17 = tpu.matmul %14, %16, %cst_15 {dimension_numbers = #tpu.dot_dimension_numbers<[1], [0], [0], [1], [0, 0, 1, 1], [], []>} : vector<8x4xbf16>, vector<4x128xbf16>, vector<8x128xf32> -> vector<8x128xf32>
      %18 = arith.addf %11, %17 : vector<8x128xf32>
      %c0_16 = arith.constant 0 : index
      %19 = arith.index_cast %4 : i32 to index
      %c1_17 = arith.constant 1 : index
      %c0_18 = arith.constant 0 : index
      %20 = vector.load %arg1[%c0_16, %19, %c1_17, %c0_18] : memref<1x18x9x4xbf16, #tpu.memory_space<vmem>>, vector<1x1x8x4xbf16>
      %21 = vector.shape_cast %20 : vector<1x1x8x4xbf16> to vector<8x4xbf16>
      %c2 = arith.constant 2 : index
      %c0_19 = arith.constant 0 : index
      %c0_20 = arith.constant 0 : index
      %22 = vector.load %arg3[%c2, %c0_19, %c0_20] : memref<9x4x128xbf16, #tpu.memory_space<vmem>>, vector<1x4x128xbf16>
      %23 = vector.shape_cast %22 : vector<1x4x128xbf16> to vector<4x128xbf16>
      %cst_21 = arith.constant dense<0.000000e+00> : vector<8x128xf32>
      %24 = tpu.matmul %21, %23, %cst_21 {dimension_numbers = #tpu.dot_dimension_numbers<[1], [0], [0], [1], [0, 0, 1, 1], [], []>} : vector<8x4xbf16>, vector<4x128xbf16>, vector<8x128xf32> -> vector<8x128xf32>
      %25 = arith.addf %18, %24 : vector<8x128xf32>
      %c2_i32_22 = arith.constant 2 : i32
      %26 = arith.muli %c2_i32_22, %arg6 : i32
      %c1_i32_23 = arith.constant 1 : i32
      %27 = arith.addi %26, %c1_i32_23 : i32
      %c0_24 = arith.constant 0 : index
      %28 = arith.index_cast %27 : i32 to index
      %c0_25 = arith.constant 0 : index
      %c0_26 = arith.constant 0 : index
      %29 = vector.load %arg1[%c0_24, %28, %c0_25, %c0_26] : memref<1x18x9x4xbf16, #tpu.memory_space<vmem>>, vector<1x1x8x4xbf16>
      %30 = vector.shape_cast %29 : vector<1x1x8x4xbf16> to vector<8x4xbf16>
      %c3 = arith.constant 3 : index
      %c0_27 = arith.constant 0 : index
      %c0_28 = arith.constant 0 : index
      %31 = vector.load %arg3[%c3, %c0_27, %c0_28] : memref<9x4x128xbf16, #tpu.memory_space<vmem>>, vector<1x4x128xbf16>
      %32 = vector.shape_cast %31 : vector<1x4x128xbf16> to vector<4x128xbf16>
      %cst_29 = arith.constant dense<0.000000e+00> : vector<8x128xf32>
      %33 = tpu.matmul %30, %32, %cst_29 {dimension_numbers = #tpu.dot_dimension_numbers<[1], [0], [0], [1], [0, 0, 1, 1], [], []>} : vector<8x4xbf16>, vector<4x128xbf16>, vector<8x128xf32> -> vector<8x128xf32>
      %34 = arith.addf %25, %33 : vector<8x128xf32>
      %c0_30 = arith.constant 0 : index
      %35 = arith.index_cast %27 : i32 to index
      %c0_31 = arith.constant 0 : index
      %c0_32 = arith.constant 0 : index
      %36 = vector.load %arg2[%c0_30, %35, %c0_31, %c0_32] : memref<1x18x9x4xbf16, #tpu.memory_space<vmem>>, vector<1x1x8x4xbf16>
      %37 = vector.shape_cast %36 : vector<1x1x8x4xbf16> to vector<8x4xbf16>
      %c4 = arith.constant 4 : index
      %c0_33 = arith.constant 0 : index
      %c0_34 = arith.constant 0 : index
      %38 = vector.load %arg3[%c4, %c0_33, %c0_34] : memref<9x4x128xbf16, #tpu.memory_space<vmem>>, vector<1x4x128xbf16>
      %39 = vector.shape_cast %38 : vector<1x4x128xbf16> to vector<4x128xbf16>
      %cst_35 = arith.constant dense<0.000000e+00> : vector<8x128xf32>
      %40 = tpu.matmul %37, %39, %cst_35 {dimension_numbers = #tpu.dot_dimension_numbers<[1], [0], [0], [1], [0, 0, 1, 1], [], []>} : vector<8x4xbf16>, vector<4x128xbf16>, vector<8x128xf32> -> vector<8x128xf32>
      %41 = arith.addf %34, %40 : vector<8x128xf32>
      %c0_36 = arith.constant 0 : index
      %42 = arith.index_cast %27 : i32 to index
      %c1_37 = arith.constant 1 : index
      %c0_38 = arith.constant 0 : index
      %43 = vector.load %arg1[%c0_36, %42, %c1_37, %c0_38] : memref<1x18x9x4xbf16, #tpu.memory_space<vmem>>, vector<1x1x8x4xbf16>
      %44 = vector.shape_cast %43 : vector<1x1x8x4xbf16> to vector<8x4xbf16>
      %c5 = arith.constant 5 : index
      %c0_39 = arith.constant 0 : index
      %c0_40 = arith.constant 0 : index
      %45 = vector.load %arg3[%c5, %c0_39, %c0_40] : memref<9x4x128xbf16, #tpu.memory_space<vmem>>, vector<1x4x128xbf16>
      %46 = vector.shape_cast %45 : vector<1x4x128xbf16> to vector<4x128xbf16>
      %cst_41 = arith.constant dense<0.000000e+00> : vector<8x128xf32>
      %47 = tpu.matmul %44, %46, %cst_41 {dimension_numbers = #tpu.dot_dimension_numbers<[1], [0], [0], [1], [0, 0, 1, 1], [], []>} : vector<8x4xbf16>, vector<4x128xbf16>, vector<8x128xf32> -> vector<8x128xf32>
      %48 = arith.addf %41, %47 : vector<8x128xf32>
      %c2_i32_42 = arith.constant 2 : i32
      %49 = arith.muli %c2_i32_42, %arg6 : i32
      %c2_i32_43 = arith.constant 2 : i32
      %50 = arith.addi %49, %c2_i32_43 : i32
      %c0_44 = arith.constant 0 : index
      %51 = arith.index_cast %50 : i32 to index
      %c0_45 = arith.constant 0 : index
      %c0_46 = arith.constant 0 : index
      %52 = vector.load %arg1[%c0_44, %51, %c0_45, %c0_46] : memref<1x18x9x4xbf16, #tpu.memory_space<vmem>>, vector<1x1x8x4xbf16>
      %53 = vector.shape_cast %52 : vector<1x1x8x4xbf16> to vector<8x4xbf16>
      %c6 = arith.constant 6 : index
      %c0_47 = arith.constant 0 : index
      %c0_48 = arith.constant 0 : index
      %54 = vector.load %arg3[%c6, %c0_47, %c0_48] : memref<9x4x128xbf16, #tpu.memory_space<vmem>>, vector<1x4x128xbf16>
      %55 = vector.shape_cast %54 : vector<1x4x128xbf16> to vector<4x128xbf16>
      %cst_49 = arith.constant dense<0.000000e+00> : vector<8x128xf32>
      %56 = tpu.matmul %53, %55, %cst_49 {dimension_numbers = #tpu.dot_dimension_numbers<[1], [0], [0], [1], [0, 0, 1, 1], [], []>} : vector<8x4xbf16>, vector<4x128xbf16>, vector<8x128xf32> -> vector<8x128xf32>
      %57 = arith.addf %48, %56 : vector<8x128xf32>
      %c0_50 = arith.constant 0 : index
      %58 = arith.index_cast %50 : i32 to index
      %c0_51 = arith.constant 0 : index
      %c0_52 = arith.constant 0 : index
      %59 = vector.load %arg2[%c0_50, %58, %c0_51, %c0_52] : memref<1x18x9x4xbf16, #tpu.memory_space<vmem>>, vector<1x1x8x4xbf16>
      %60 = vector.shape_cast %59 : vector<1x1x8x4xbf16> to vector<8x4xbf16>
      %c7 = arith.constant 7 : index
      %c0_53 = arith.constant 0 : index
      %c0_54 = arith.constant 0 : index
      %61 = vector.load %arg3[%c7, %c0_53, %c0_54] : memref<9x4x128xbf16, #tpu.memory_space<vmem>>, vector<1x4x128xbf16>
      %62 = vector.shape_cast %61 : vector<1x4x128xbf16> to vector<4x128xbf16>
      %cst_55 = arith.constant dense<0.000000e+00> : vector<8x128xf32>
      %63 = tpu.matmul %60, %62, %cst_55 {dimension_numbers = #tpu.dot_dimension_numbers<[1], [0], [0], [1], [0, 0, 1, 1], [], []>} : vector<8x4xbf16>, vector<4x128xbf16>, vector<8x128xf32> -> vector<8x128xf32>
      %64 = arith.addf %57, %63 : vector<8x128xf32>
      %c0_56 = arith.constant 0 : index
      %65 = arith.index_cast %50 : i32 to index
      %c1_57 = arith.constant 1 : index
      %c0_58 = arith.constant 0 : index
      %66 = vector.load %arg1[%c0_56, %65, %c1_57, %c0_58] : memref<1x18x9x4xbf16, #tpu.memory_space<vmem>>, vector<1x1x8x4xbf16>
      %67 = vector.shape_cast %66 : vector<1x1x8x4xbf16> to vector<8x4xbf16>
      %c8 = arith.constant 8 : index
      %c0_59 = arith.constant 0 : index
      %c0_60 = arith.constant 0 : index
      %68 = vector.load %arg3[%c8, %c0_59, %c0_60] : memref<9x4x128xbf16, #tpu.memory_space<vmem>>, vector<1x4x128xbf16>
      %69 = vector.shape_cast %68 : vector<1x4x128xbf16> to vector<4x128xbf16>
      %cst_61 = arith.constant dense<0.000000e+00> : vector<8x128xf32>
      %70 = tpu.matmul %67, %69, %cst_61 {dimension_numbers = #tpu.dot_dimension_numbers<[1], [0], [0], [1], [0, 0, 1, 1], [], []>} : vector<8x4xbf16>, vector<4x128xbf16>, vector<8x128xf32> -> vector<8x128xf32>
      %71 = arith.addf %64, %70 : vector<8x128xf32>
      %72 = vector.broadcast %0 : vector<1x128xf32> to vector<8x128xf32>
      %73 = arith.addf %71, %72 : vector<8x128xf32>
      %cst_62 = arith.constant 0.000000e+00 : f32
      %74 = vector.broadcast %cst_62 : f32 to vector<8x128xf32>
      %75 = arith.maximumf %73, %74 : vector<8x128xf32>
      %76 = arith.truncf %75 : vector<8x128xf32> to vector<8x128xbf16>
      %c0_63 = arith.constant 0 : index
      %77 = arith.index_cast %arg6 : i32 to index
      %c0_64 = arith.constant 0 : index
      %c0_65 = arith.constant 0 : index
      %78 = vector.load %arg5[%c0_63, %77, %c0_64, %c0_65] : memref<1x8x8x128xbf16, #tpu.memory_space<vmem>>, vector<1x1x8x128xbf16>
      %79 = vector.shape_cast %78 : vector<1x1x8x128xbf16> to vector<8x128xbf16>
      %80 = vector.shape_cast %76 : vector<8x128xbf16> to vector<1x1x8x128xbf16>
      tpu.vector_store %arg5[%c0_63, %77, %c0_64, %c0_65], %80 {strides = array<i32>} : memref<1x8x8x128xbf16, #tpu.memory_space<vmem>>, vector<1x1x8x128xbf16>,
    }
    %c8_i32_1 = arith.constant 8 : i32
    return
  }
  func.func @transform_0(%arg0: i32) -> (i32, i32, i32, i32) {
    %c0_i32 = arith.constant 0 : i32
    %c0_i32_0 = arith.constant 0 : i32
    %c0_i32_1 = arith.constant 0 : i32
    %c0_i32_2 = arith.constant 0 : i32
    return %arg0, %c0_i32, %c0_i32_0, %c0_i32_1 : i32, i32, i32, i32
  }
  func.func @transform_1(%arg0: i32) -> (i32, i32, i32, i32) {
    %c0_i32 = arith.constant 0 : i32
    %c0_i32_0 = arith.constant 0 : i32
    %c0_i32_1 = arith.constant 0 : i32
    %c0_i32_2 = arith.constant 0 : i32
    return %arg0, %c0_i32, %c0_i32_0, %c0_i32_1 : i32, i32, i32, i32
  }
  func.func @transform_2(%arg0: i32) -> (i32, i32, i32) {
    %c0_i32 = arith.constant 0 : i32
    %c0_i32_0 = arith.constant 0 : i32
    %c0_i32_1 = arith.constant 0 : i32
    %c0_i32_2 = arith.constant 0 : i32
    return %c0_i32, %c0_i32_0, %c0_i32_1 : i32, i32, i32
  }
  func.func @transform_3(%arg0: i32) -> (i32, i32) {
    %c0_i32 = arith.constant 0 : i32
    %c0_i32_0 = arith.constant 0 : i32
    %c0_i32_1 = arith.constant 0 : i32
    return %c0_i32, %c0_i32_0 : i32, i32
  }
  func.func @transform_4(%arg0: i32) -> (i32, i32, i32, i32) {
    %c0_i32 = arith.constant 0 : i32
    %c0_i32_0 = arith.constant 0 : i32
    %c0_i32_1 = arith.constant 0 : i32
    %c0_i32_2 = arith.constant 0 : i32
    return %arg0, %c0_i32, %c0_i32_0, %c0_i32_1 : i32, i32, i32, i32
  }
}

module attributes {stable_mosaic.version = 11 : i64} {
  func.func @_conv3x3_s2_kernel(%arg0: i32, %arg1: memref<1x10x5x128xbf16, #tpu.memory_space<vmem>>, %arg2: memref<1x10x5x128xbf16, #tpu.memory_space<vmem>>, %arg3: memref<9x128x128xbf16, #tpu.memory_space<vmem>>, %arg4: memref<1x128xf32, #tpu.memory_space<vmem>>, %arg5: memref<1x4x4x128xbf16, #tpu.memory_space<vmem>>) attributes {dimension_semantics = [#tpu.dimension_semantics<parallel>], iteration_bounds = array<i64: 2>, scalar_prefetch = 0 : i64, scratch_operands = 0 : i64, tpu.core_type = #tpu.core_type<tc>, window_params = [{transform_indices = @transform_0, window_bounds = array<i64: 1, 10, 5, 128>}, {transform_indices = @transform_1, window_bounds = array<i64: 1, 10, 5, 128>}, {pipeline_mode = #tpu.pipeline_mode<synchronous>, transform_indices = @transform_2, window_bounds = array<i64: 9, 128, 128>}, {pipeline_mode = #tpu.pipeline_mode<synchronous>, transform_indices = @transform_3, window_bounds = array<i64: 1, 128>}, {transform_indices = @transform_4, window_bounds = array<i64: 1, 4, 4, 128>}]} {
    %c0 = arith.constant 0 : index
    %c0_0 = arith.constant 0 : index
    %0 = vector.load %arg4[%c0, %c0_0] : memref<1x128xf32, #tpu.memory_space<vmem>>, vector<1x128xf32>
    %c0_i32 = arith.constant 0 : i32
    %c4_i32 = arith.constant 4 : i32
    %1 = arith.addi %c0_i32, %c4_i32 : i32
    %c1_i32 = arith.constant 1 : i32
    scf.for %arg6 = %c0_i32 to %1 step %c1_i32  : i32 {
      %cst = arith.constant 0.000000e+00 : f32
      %2 = vector.broadcast %cst : f32 to vector<4x128xf32>
      %c2_i32 = arith.constant 2 : i32
      %3 = arith.muli %c2_i32, %arg6 : i32
      %c0_i32_2 = arith.constant 0 : i32
      %4 = arith.addi %3, %c0_i32_2 : i32
      %c0_3 = arith.constant 0 : index
      %5 = arith.index_cast %4 : i32 to index
      %c0_4 = arith.constant 0 : index
      %c0_5 = arith.constant 0 : index
      %6 = vector.load %arg1[%c0_3, %5, %c0_4, %c0_5] : memref<1x10x5x128xbf16, #tpu.memory_space<vmem>>, vector<1x1x4x128xbf16>
      %7 = vector.shape_cast %6 : vector<1x1x4x128xbf16> to vector<4x128xbf16>
      %c0_6 = arith.constant 0 : index
      %c0_7 = arith.constant 0 : index
      %c0_8 = arith.constant 0 : index
      %8 = vector.load %arg3[%c0_6, %c0_7, %c0_8] : memref<9x128x128xbf16, #tpu.memory_space<vmem>>, vector<1x128x128xbf16>
      %9 = vector.shape_cast %8 : vector<1x128x128xbf16> to vector<128x128xbf16>
      %cst_9 = arith.constant dense<0.000000e+00> : vector<4x128xf32>
      %10 = tpu.matmul %7, %9, %cst_9 {dimension_numbers = #tpu.dot_dimension_numbers<[1], [0], [0], [1], [0, 0, 1, 1], [], []>} : vector<4x128xbf16>, vector<128x128xbf16>, vector<4x128xf32> -> vector<4x128xf32>
      %11 = arith.addf %2, %10 : vector<4x128xf32>
      %c0_10 = arith.constant 0 : index
      %12 = arith.index_cast %4 : i32 to index
      %c0_11 = arith.constant 0 : index
      %c0_12 = arith.constant 0 : index
      %13 = vector.load %arg2[%c0_10, %12, %c0_11, %c0_12] : memref<1x10x5x128xbf16, #tpu.memory_space<vmem>>, vector<1x1x4x128xbf16>
      %14 = vector.shape_cast %13 : vector<1x1x4x128xbf16> to vector<4x128xbf16>
      %c1 = arith.constant 1 : index
      %c0_13 = arith.constant 0 : index
      %c0_14 = arith.constant 0 : index
      %15 = vector.load %arg3[%c1, %c0_13, %c0_14] : memref<9x128x128xbf16, #tpu.memory_space<vmem>>, vector<1x128x128xbf16>
      %16 = vector.shape_cast %15 : vector<1x128x128xbf16> to vector<128x128xbf16>
      %cst_15 = arith.constant dense<0.000000e+00> : vector<4x128xf32>
      %17 = tpu.matmul %14, %16, %cst_15 {dimension_numbers = #tpu.dot_dimension_numbers<[1], [0], [0], [1], [0, 0, 1, 1], [], []>} : vector<4x128xbf16>, vector<128x128xbf16>, vector<4x128xf32> -> vector<4x128xf32>
      %18 = arith.addf %11, %17 : vector<4x128xf32>
      %c0_16 = arith.constant 0 : index
      %19 = arith.index_cast %4 : i32 to index
      %c1_17 = arith.constant 1 : index
      %c0_18 = arith.constant 0 : index
      %20 = vector.load %arg1[%c0_16, %19, %c1_17, %c0_18] : memref<1x10x5x128xbf16, #tpu.memory_space<vmem>>, vector<1x1x4x128xbf16>
      %21 = vector.shape_cast %20 : vector<1x1x4x128xbf16> to vector<4x128xbf16>
      %c2 = arith.constant 2 : index
      %c0_19 = arith.constant 0 : index
      %c0_20 = arith.constant 0 : index
      %22 = vector.load %arg3[%c2, %c0_19, %c0_20] : memref<9x128x128xbf16, #tpu.memory_space<vmem>>, vector<1x128x128xbf16>
      %23 = vector.shape_cast %22 : vector<1x128x128xbf16> to vector<128x128xbf16>
      %cst_21 = arith.constant dense<0.000000e+00> : vector<4x128xf32>
      %24 = tpu.matmul %21, %23, %cst_21 {dimension_numbers = #tpu.dot_dimension_numbers<[1], [0], [0], [1], [0, 0, 1, 1], [], []>} : vector<4x128xbf16>, vector<128x128xbf16>, vector<4x128xf32> -> vector<4x128xf32>
      %25 = arith.addf %18, %24 : vector<4x128xf32>
      %c2_i32_22 = arith.constant 2 : i32
      %26 = arith.muli %c2_i32_22, %arg6 : i32
      %c1_i32_23 = arith.constant 1 : i32
      %27 = arith.addi %26, %c1_i32_23 : i32
      %c0_24 = arith.constant 0 : index
      %28 = arith.index_cast %27 : i32 to index
      %c0_25 = arith.constant 0 : index
      %c0_26 = arith.constant 0 : index
      %29 = vector.load %arg1[%c0_24, %28, %c0_25, %c0_26] : memref<1x10x5x128xbf16, #tpu.memory_space<vmem>>, vector<1x1x4x128xbf16>
      %30 = vector.shape_cast %29 : vector<1x1x4x128xbf16> to vector<4x128xbf16>
      %c3 = arith.constant 3 : index
      %c0_27 = arith.constant 0 : index
      %c0_28 = arith.constant 0 : index
      %31 = vector.load %arg3[%c3, %c0_27, %c0_28] : memref<9x128x128xbf16, #tpu.memory_space<vmem>>, vector<1x128x128xbf16>
      %32 = vector.shape_cast %31 : vector<1x128x128xbf16> to vector<128x128xbf16>
      %cst_29 = arith.constant dense<0.000000e+00> : vector<4x128xf32>
      %33 = tpu.matmul %30, %32, %cst_29 {dimension_numbers = #tpu.dot_dimension_numbers<[1], [0], [0], [1], [0, 0, 1, 1], [], []>} : vector<4x128xbf16>, vector<128x128xbf16>, vector<4x128xf32> -> vector<4x128xf32>
      %34 = arith.addf %25, %33 : vector<4x128xf32>
      %c0_30 = arith.constant 0 : index
      %35 = arith.index_cast %27 : i32 to index
      %c0_31 = arith.constant 0 : index
      %c0_32 = arith.constant 0 : index
      %36 = vector.load %arg2[%c0_30, %35, %c0_31, %c0_32] : memref<1x10x5x128xbf16, #tpu.memory_space<vmem>>, vector<1x1x4x128xbf16>
      %37 = vector.shape_cast %36 : vector<1x1x4x128xbf16> to vector<4x128xbf16>
      %c4 = arith.constant 4 : index
      %c0_33 = arith.constant 0 : index
      %c0_34 = arith.constant 0 : index
      %38 = vector.load %arg3[%c4, %c0_33, %c0_34] : memref<9x128x128xbf16, #tpu.memory_space<vmem>>, vector<1x128x128xbf16>
      %39 = vector.shape_cast %38 : vector<1x128x128xbf16> to vector<128x128xbf16>
      %cst_35 = arith.constant dense<0.000000e+00> : vector<4x128xf32>
      %40 = tpu.matmul %37, %39, %cst_35 {dimension_numbers = #tpu.dot_dimension_numbers<[1], [0], [0], [1], [0, 0, 1, 1], [], []>} : vector<4x128xbf16>, vector<128x128xbf16>, vector<4x128xf32> -> vector<4x128xf32>
      %41 = arith.addf %34, %40 : vector<4x128xf32>
      %c0_36 = arith.constant 0 : index
      %42 = arith.index_cast %27 : i32 to index
      %c1_37 = arith.constant 1 : index
      %c0_38 = arith.constant 0 : index
      %43 = vector.load %arg1[%c0_36, %42, %c1_37, %c0_38] : memref<1x10x5x128xbf16, #tpu.memory_space<vmem>>, vector<1x1x4x128xbf16>
      %44 = vector.shape_cast %43 : vector<1x1x4x128xbf16> to vector<4x128xbf16>
      %c5 = arith.constant 5 : index
      %c0_39 = arith.constant 0 : index
      %c0_40 = arith.constant 0 : index
      %45 = vector.load %arg3[%c5, %c0_39, %c0_40] : memref<9x128x128xbf16, #tpu.memory_space<vmem>>, vector<1x128x128xbf16>
      %46 = vector.shape_cast %45 : vector<1x128x128xbf16> to vector<128x128xbf16>
      %cst_41 = arith.constant dense<0.000000e+00> : vector<4x128xf32>
      %47 = tpu.matmul %44, %46, %cst_41 {dimension_numbers = #tpu.dot_dimension_numbers<[1], [0], [0], [1], [0, 0, 1, 1], [], []>} : vector<4x128xbf16>, vector<128x128xbf16>, vector<4x128xf32> -> vector<4x128xf32>
      %48 = arith.addf %41, %47 : vector<4x128xf32>
      %c2_i32_42 = arith.constant 2 : i32
      %49 = arith.muli %c2_i32_42, %arg6 : i32
      %c2_i32_43 = arith.constant 2 : i32
      %50 = arith.addi %49, %c2_i32_43 : i32
      %c0_44 = arith.constant 0 : index
      %51 = arith.index_cast %50 : i32 to index
      %c0_45 = arith.constant 0 : index
      %c0_46 = arith.constant 0 : index
      %52 = vector.load %arg1[%c0_44, %51, %c0_45, %c0_46] : memref<1x10x5x128xbf16, #tpu.memory_space<vmem>>, vector<1x1x4x128xbf16>
      %53 = vector.shape_cast %52 : vector<1x1x4x128xbf16> to vector<4x128xbf16>
      %c6 = arith.constant 6 : index
      %c0_47 = arith.constant 0 : index
      %c0_48 = arith.constant 0 : index
      %54 = vector.load %arg3[%c6, %c0_47, %c0_48] : memref<9x128x128xbf16, #tpu.memory_space<vmem>>, vector<1x128x128xbf16>
      %55 = vector.shape_cast %54 : vector<1x128x128xbf16> to vector<128x128xbf16>
      %cst_49 = arith.constant dense<0.000000e+00> : vector<4x128xf32>
      %56 = tpu.matmul %53, %55, %cst_49 {dimension_numbers = #tpu.dot_dimension_numbers<[1], [0], [0], [1], [0, 0, 1, 1], [], []>} : vector<4x128xbf16>, vector<128x128xbf16>, vector<4x128xf32> -> vector<4x128xf32>
      %57 = arith.addf %48, %56 : vector<4x128xf32>
      %c0_50 = arith.constant 0 : index
      %58 = arith.index_cast %50 : i32 to index
      %c0_51 = arith.constant 0 : index
      %c0_52 = arith.constant 0 : index
      %59 = vector.load %arg2[%c0_50, %58, %c0_51, %c0_52] : memref<1x10x5x128xbf16, #tpu.memory_space<vmem>>, vector<1x1x4x128xbf16>
      %60 = vector.shape_cast %59 : vector<1x1x4x128xbf16> to vector<4x128xbf16>
      %c7 = arith.constant 7 : index
      %c0_53 = arith.constant 0 : index
      %c0_54 = arith.constant 0 : index
      %61 = vector.load %arg3[%c7, %c0_53, %c0_54] : memref<9x128x128xbf16, #tpu.memory_space<vmem>>, vector<1x128x128xbf16>
      %62 = vector.shape_cast %61 : vector<1x128x128xbf16> to vector<128x128xbf16>
      %cst_55 = arith.constant dense<0.000000e+00> : vector<4x128xf32>
      %63 = tpu.matmul %60, %62, %cst_55 {dimension_numbers = #tpu.dot_dimension_numbers<[1], [0], [0], [1], [0, 0, 1, 1], [], []>} : vector<4x128xbf16>, vector<128x128xbf16>, vector<4x128xf32> -> vector<4x128xf32>
      %64 = arith.addf %57, %63 : vector<4x128xf32>
      %c0_56 = arith.constant 0 : index
      %65 = arith.index_cast %50 : i32 to index
      %c1_57 = arith.constant 1 : index
      %c0_58 = arith.constant 0 : index
      %66 = vector.load %arg1[%c0_56, %65, %c1_57, %c0_58] : memref<1x10x5x128xbf16, #tpu.memory_space<vmem>>, vector<1x1x4x128xbf16>
      %67 = vector.shape_cast %66 : vector<1x1x4x128xbf16> to vector<4x128xbf16>
      %c8 = arith.constant 8 : index
      %c0_59 = arith.constant 0 : index
      %c0_60 = arith.constant 0 : index
      %68 = vector.load %arg3[%c8, %c0_59, %c0_60] : memref<9x128x128xbf16, #tpu.memory_space<vmem>>, vector<1x128x128xbf16>
      %69 = vector.shape_cast %68 : vector<1x128x128xbf16> to vector<128x128xbf16>
      %cst_61 = arith.constant dense<0.000000e+00> : vector<4x128xf32>
      %70 = tpu.matmul %67, %69, %cst_61 {dimension_numbers = #tpu.dot_dimension_numbers<[1], [0], [0], [1], [0, 0, 1, 1], [], []>} : vector<4x128xbf16>, vector<128x128xbf16>, vector<4x128xf32> -> vector<4x128xf32>
      %71 = arith.addf %64, %70 : vector<4x128xf32>
      %72 = vector.broadcast %0 : vector<1x128xf32> to vector<4x128xf32>
      %73 = arith.addf %71, %72 : vector<4x128xf32>
      %cst_62 = arith.constant 0.000000e+00 : f32
      %74 = vector.broadcast %cst_62 : f32 to vector<4x128xf32>
      %75 = arith.maximumf %73, %74 : vector<4x128xf32>
      %76 = arith.truncf %75 : vector<4x128xf32> to vector<4x128xbf16>
      %c0_63 = arith.constant 0 : index
      %77 = arith.index_cast %arg6 : i32 to index
      %c0_64 = arith.constant 0 : index
      %c0_65 = arith.constant 0 : index
      %78 = vector.load %arg5[%c0_63, %77, %c0_64, %c0_65] : memref<1x4x4x128xbf16, #tpu.memory_space<vmem>>, vector<1x1x4x128xbf16>
      %79 = vector.shape_cast %78 : vector<1x1x4x128xbf16> to vector<4x128xbf16>
      %80 = vector.shape_cast %76 : vector<4x128xbf16> to vector<1x1x4x128xbf16>
      tpu.vector_store %arg5[%c0_63, %77, %c0_64, %c0_65], %80 {strides = array<i32>} : memref<1x4x4x128xbf16, #tpu.memory_space<vmem>>, vector<1x1x4x128xbf16>,
    }
    %c4_i32_1 = arith.constant 4 : i32
    return
  }
  func.func @transform_0(%arg0: i32) -> (i32, i32, i32, i32) {
    %c0_i32 = arith.constant 0 : i32
    %c0_i32_0 = arith.constant 0 : i32
    %c0_i32_1 = arith.constant 0 : i32
    %c0_i32_2 = arith.constant 0 : i32
    return %arg0, %c0_i32, %c0_i32_0, %c0_i32_1 : i32, i32, i32, i32
  }
  func.func @transform_1(%arg0: i32) -> (i32, i32, i32, i32) {
    %c0_i32 = arith.constant 0 : i32
    %c0_i32_0 = arith.constant 0 : i32
    %c0_i32_1 = arith.constant 0 : i32
    %c0_i32_2 = arith.constant 0 : i32
    return %arg0, %c0_i32, %c0_i32_0, %c0_i32_1 : i32, i32, i32, i32
  }
  func.func @transform_2(%arg0: i32) -> (i32, i32, i32) {
    %c0_i32 = arith.constant 0 : i32
    %c0_i32_0 = arith.constant 0 : i32
    %c0_i32_1 = arith.constant 0 : i32
    %c0_i32_2 = arith.constant 0 : i32
    return %c0_i32, %c0_i32_0, %c0_i32_1 : i32, i32, i32
  }
  func.func @transform_3(%arg0: i32) -> (i32, i32) {
    %c0_i32 = arith.constant 0 : i32
    %c0_i32_0 = arith.constant 0 : i32
    %c0_i32_1 = arith.constant 0 : i32
    return %c0_i32, %c0_i32_0 : i32, i32
  }
  func.func @transform_4(%arg0: i32) -> (i32, i32, i32, i32) {
    %c0_i32 = arith.constant 0 : i32
    %c0_i32_0 = arith.constant 0 : i32
    %c0_i32_1 = arith.constant 0 : i32
    %c0_i32_2 = arith.constant 0 : i32
    return %arg0, %c0_i32, %c0_i32_0, %c0_i32_1 : i32, i32, i32, i32
  }
}

module attributes {stable_mosaic.version = 11 : i64} {
  func.func @_pool_fc_kernel(%arg0: i32, %arg1: memref<2x4x128xbf16, #tpu.memory_space<vmem>>, %arg2: memref<128x128xf32, #tpu.memory_space<vmem>>, %arg3: memref<1x128xf32, #tpu.memory_space<vmem>>, %arg4: memref<2x128xf32, #tpu.memory_space<vmem>>, %arg5: memref<2x128xf32, #tpu.memory_space<vmem>>) attributes {dimension_semantics = [#tpu.dimension_semantics<arbitrary>], iteration_bounds = array<i64: 1>, scalar_prefetch = 0 : i64, scratch_operands = 1 : i64, tpu.core_type = #tpu.core_type<tc>, window_params = [{transform_indices = @transform_0, window_bounds = array<i64: 2, 4, 128>}, {pipeline_mode = #tpu.pipeline_mode<synchronous>, transform_indices = @transform_1, window_bounds = array<i64: 128, 128>}, {pipeline_mode = #tpu.pipeline_mode<synchronous>, transform_indices = @transform_2, window_bounds = array<i64: 1, 128>}, {pipeline_mode = #tpu.pipeline_mode<synchronous>, transform_indices = @transform_3, window_bounds = array<i64: 2, 128>}]} {
    %c0_i32 = arith.constant 0 : i32
    %0 = arith.cmpi eq, %arg0, %c0_i32 : i32
    %1 = arith.extui %0 : i1 to i32
    %c0_i32_0 = arith.constant 0 : i32
    %2 = arith.cmpi ne, %1, %c0_i32_0 : i32
    scf.if %2 {
      %cst_11 = arith.constant 0.000000e+00 : f32
      %20 = vector.broadcast %cst_11 : f32 to vector<2x128xf32>
      %c0_12 = arith.constant 0 : index
      %c0_13 = arith.constant 0 : index
      %21 = vector.load %arg5[%c0_12, %c0_13] : memref<2x128xf32, #tpu.memory_space<vmem>>, vector<2x128xf32>
      tpu.vector_store %arg5[%c0_12, %c0_13], %20 {strides = array<i32>} : memref<2x128xf32, #tpu.memory_space<vmem>>, vector<2x128xf32>,
    } else {
    }
    %c0 = arith.constant 0 : index
    %c0_1 = arith.constant 0 : index
    %c0_2 = arith.constant 0 : index
    %3 = vector.load %arg1[%c0, %c0_1, %c0_2] : memref<2x4x128xbf16, #tpu.memory_space<vmem>>, vector<2x4x128xbf16>
    %4 = arith.extf %3 : vector<2x4x128xbf16> to vector<2x4x128xf32>
    %5 = tpu.iota {dimensions = array<i32: 1>} : vector<2x4x128xi32>
    %c4_i32 = arith.constant 4 : i32
    %6 = arith.muli %arg0, %c4_i32 : i32
    %7 = vector.broadcast %6 : i32 to vector<2x4x128xi32>
    %8 = arith.addi %5, %7 : vector<2x4x128xi32>
    %c4_i32_3 = arith.constant 4 : i32
    %9 = vector.broadcast %c4_i32_3 : i32 to vector<2x4x128xi32>
    %10 = arith.cmpi slt, %8, %9 : vector<2x4x128xi32>
    %cst = arith.constant 0.000000e+00 : f32
    %11 = vector.broadcast %cst : f32 to vector<2x4x128xf32>
    %12 = arith.select %10, %4, %11 : vector<2x4x128xi1>, vector<2x4x128xf32>
    %c0_4 = arith.constant 0 : index
    %c0_5 = arith.constant 0 : index
    %13 = vector.load %arg5[%c0_4, %c0_5] : memref<2x128xf32, #tpu.memory_space<vmem>>, vector<2x128xf32>
    %cst_6 = arith.constant dense<0.000000e+00> : vector<2x128xf32>
    %14 = vector.multi_reduction <add>, %12, %cst_6 [1] : vector<2x4x128xf32> to vector<2x128xf32>
    %15 = arith.addf %13, %14 : vector<2x128xf32>
    %c0_7 = arith.constant 0 : index
    %c0_8 = arith.constant 0 : index
    %16 = vector.load %arg5[%c0_7, %c0_8] : memref<2x128xf32, #tpu.memory_space<vmem>>, vector<2x128xf32>
    tpu.vector_store %arg5[%c0_7, %c0_8], %15 {strides = array<i32>} : memref<2x128xf32, #tpu.memory_space<vmem>>, vector<2x128xf32>,
    %c0_i32_9 = arith.constant 0 : i32
    %17 = arith.cmpi eq, %arg0, %c0_i32_9 : i32
    %18 = arith.extui %17 : i1 to i32
    %c0_i32_10 = arith.constant 0 : i32
    %19 = arith.cmpi ne, %18, %c0_i32_10 : i32
    scf.if %19 {
      %c0_11 = arith.constant 0 : index
      %c0_12 = arith.constant 0 : index
      %20 = vector.load %arg5[%c0_11, %c0_12] : memref<2x128xf32, #tpu.memory_space<vmem>>, vector<2x128xf32>
      %cst_13 = arith.constant 2.500000e-01 : f32
      %21 = vector.broadcast %cst_13 : f32 to vector<2x128xf32>
      %22 = arith.mulf %20, %21 : vector<2x128xf32>
      %c0_14 = arith.constant 0 : index
      %c0_15 = arith.constant 0 : index
      %23 = vector.load %arg2[%c0_14, %c0_15] : memref<128x128xf32, #tpu.memory_space<vmem>>, vector<128x128xf32>
      %cst_16 = arith.constant dense<0.000000e+00> : vector<2x128xf32>
      %24 = tpu.matmul %22, %23, %cst_16 {dimension_numbers = #tpu.dot_dimension_numbers<[1], [0], [0], [1], [0, 0, 1, 1], [], []>} : vector<2x128xf32>, vector<128x128xf32>, vector<2x128xf32> -> vector<2x128xf32>
      %c0_17 = arith.constant 0 : index
      %c0_18 = arith.constant 0 : index
      %25 = vector.load %arg3[%c0_17, %c0_18] : memref<1x128xf32, #tpu.memory_space<vmem>>, vector<1x128xf32>
      %26 = vector.broadcast %25 : vector<1x128xf32> to vector<2x128xf32>
      %27 = arith.addf %24, %26 : vector<2x128xf32>
      %c0_19 = arith.constant 0 : index
      %c0_20 = arith.constant 0 : index
      %28 = vector.load %arg4[%c0_19, %c0_20] : memref<2x128xf32, #tpu.memory_space<vmem>>, vector<2x128xf32>
      tpu.vector_store %arg4[%c0_19, %c0_20], %27 {strides = array<i32>} : memref<2x128xf32, #tpu.memory_space<vmem>>, vector<2x128xf32>,
    } else {
    }
    return
  }
  func.func @transform_0(%arg0: i32) -> (i32, i32, i32) {
    %c0_i32 = arith.constant 0 : i32
    %c0_i32_0 = arith.constant 0 : i32
    %c0_i32_1 = arith.constant 0 : i32
    return %c0_i32, %arg0, %c0_i32_0 : i32, i32, i32
  }
  func.func @transform_1(%arg0: i32) -> (i32, i32) {
    %c0_i32 = arith.constant 0 : i32
    %c0_i32_0 = arith.constant 0 : i32
    %c0_i32_1 = arith.constant 0 : i32
    return %c0_i32, %c0_i32_0 : i32, i32
  }
  func.func @transform_2(%arg0: i32) -> (i32, i32) {
    %c0_i32 = arith.constant 0 : i32
    %c0_i32_0 = arith.constant 0 : i32
    %c0_i32_1 = arith.constant 0 : i32
    return %c0_i32, %c0_i32_0 : i32, i32
  }
  func.func @transform_3(%arg0: i32) -> (i32, i32) {
    %c0_i32 = arith.constant 0 : i32
    %c0_i32_0 = arith.constant 0 : i32
    %c0_i32_1 = arith.constant 0 : i32
    return %c0_i32, %c0_i32_0 : i32, i32
  }
}

module attributes {stable_mosaic.version = 11 : i64} {
  func.func @_conv3x3_s2_kernel(%arg0: i32, %arg1: memref<1x6x3x128xbf16, #tpu.memory_space<vmem>>, %arg2: memref<1x6x3x128xbf16, #tpu.memory_space<vmem>>, %arg3: memref<9x128x128xbf16, #tpu.memory_space<vmem>>, %arg4: memref<1x128xf32, #tpu.memory_space<vmem>>, %arg5: memref<1x2x2x128xbf16, #tpu.memory_space<vmem>>) attributes {dimension_semantics = [#tpu.dimension_semantics<parallel>], iteration_bounds = array<i64: 2>, scalar_prefetch = 0 : i64, scratch_operands = 0 : i64, tpu.core_type = #tpu.core_type<tc>, window_params = [{transform_indices = @transform_0, window_bounds = array<i64: 1, 6, 3, 128>}, {transform_indices = @transform_1, window_bounds = array<i64: 1, 6, 3, 128>}, {pipeline_mode = #tpu.pipeline_mode<synchronous>, transform_indices = @transform_2, window_bounds = array<i64: 9, 128, 128>}, {pipeline_mode = #tpu.pipeline_mode<synchronous>, transform_indices = @transform_3, window_bounds = array<i64: 1, 128>}, {transform_indices = @transform_4, window_bounds = array<i64: 1, 2, 2, 128>}]} {
    %c0 = arith.constant 0 : index
    %c0_0 = arith.constant 0 : index
    %0 = vector.load %arg4[%c0, %c0_0] : memref<1x128xf32, #tpu.memory_space<vmem>>, vector<1x128xf32>
    %c0_i32 = arith.constant 0 : i32
    %c2_i32 = arith.constant 2 : i32
    %1 = arith.addi %c0_i32, %c2_i32 : i32
    %c1_i32 = arith.constant 1 : i32
    scf.for %arg6 = %c0_i32 to %1 step %c1_i32  : i32 {
      %cst = arith.constant 0.000000e+00 : f32
      %2 = vector.broadcast %cst : f32 to vector<2x128xf32>
      %c2_i32_2 = arith.constant 2 : i32
      %3 = arith.muli %c2_i32_2, %arg6 : i32
      %c0_i32_3 = arith.constant 0 : i32
      %4 = arith.addi %3, %c0_i32_3 : i32
      %c0_4 = arith.constant 0 : index
      %5 = arith.index_cast %4 : i32 to index
      %c0_5 = arith.constant 0 : index
      %c0_6 = arith.constant 0 : index
      %6 = vector.load %arg1[%c0_4, %5, %c0_5, %c0_6] : memref<1x6x3x128xbf16, #tpu.memory_space<vmem>>, vector<1x1x2x128xbf16>
      %7 = vector.shape_cast %6 : vector<1x1x2x128xbf16> to vector<2x128xbf16>
      %c0_7 = arith.constant 0 : index
      %c0_8 = arith.constant 0 : index
      %c0_9 = arith.constant 0 : index
      %8 = vector.load %arg3[%c0_7, %c0_8, %c0_9] : memref<9x128x128xbf16, #tpu.memory_space<vmem>>, vector<1x128x128xbf16>
      %9 = vector.shape_cast %8 : vector<1x128x128xbf16> to vector<128x128xbf16>
      %cst_10 = arith.constant dense<0.000000e+00> : vector<2x128xf32>
      %10 = tpu.matmul %7, %9, %cst_10 {dimension_numbers = #tpu.dot_dimension_numbers<[1], [0], [0], [1], [0, 0, 1, 1], [], []>} : vector<2x128xbf16>, vector<128x128xbf16>, vector<2x128xf32> -> vector<2x128xf32>
      %11 = arith.addf %2, %10 : vector<2x128xf32>
      %c0_11 = arith.constant 0 : index
      %12 = arith.index_cast %4 : i32 to index
      %c0_12 = arith.constant 0 : index
      %c0_13 = arith.constant 0 : index
      %13 = vector.load %arg2[%c0_11, %12, %c0_12, %c0_13] : memref<1x6x3x128xbf16, #tpu.memory_space<vmem>>, vector<1x1x2x128xbf16>
      %14 = vector.shape_cast %13 : vector<1x1x2x128xbf16> to vector<2x128xbf16>
      %c1 = arith.constant 1 : index
      %c0_14 = arith.constant 0 : index
      %c0_15 = arith.constant 0 : index
      %15 = vector.load %arg3[%c1, %c0_14, %c0_15] : memref<9x128x128xbf16, #tpu.memory_space<vmem>>, vector<1x128x128xbf16>
      %16 = vector.shape_cast %15 : vector<1x128x128xbf16> to vector<128x128xbf16>
      %cst_16 = arith.constant dense<0.000000e+00> : vector<2x128xf32>
      %17 = tpu.matmul %14, %16, %cst_16 {dimension_numbers = #tpu.dot_dimension_numbers<[1], [0], [0], [1], [0, 0, 1, 1], [], []>} : vector<2x128xbf16>, vector<128x128xbf16>, vector<2x128xf32> -> vector<2x128xf32>
      %18 = arith.addf %11, %17 : vector<2x128xf32>
      %c0_17 = arith.constant 0 : index
      %19 = arith.index_cast %4 : i32 to index
      %c1_18 = arith.constant 1 : index
      %c0_19 = arith.constant 0 : index
      %20 = vector.load %arg1[%c0_17, %19, %c1_18, %c0_19] : memref<1x6x3x128xbf16, #tpu.memory_space<vmem>>, vector<1x1x2x128xbf16>
      %21 = vector.shape_cast %20 : vector<1x1x2x128xbf16> to vector<2x128xbf16>
      %c2 = arith.constant 2 : index
      %c0_20 = arith.constant 0 : index
      %c0_21 = arith.constant 0 : index
      %22 = vector.load %arg3[%c2, %c0_20, %c0_21] : memref<9x128x128xbf16, #tpu.memory_space<vmem>>, vector<1x128x128xbf16>
      %23 = vector.shape_cast %22 : vector<1x128x128xbf16> to vector<128x128xbf16>
      %cst_22 = arith.constant dense<0.000000e+00> : vector<2x128xf32>
      %24 = tpu.matmul %21, %23, %cst_22 {dimension_numbers = #tpu.dot_dimension_numbers<[1], [0], [0], [1], [0, 0, 1, 1], [], []>} : vector<2x128xbf16>, vector<128x128xbf16>, vector<2x128xf32> -> vector<2x128xf32>
      %25 = arith.addf %18, %24 : vector<2x128xf32>
      %c2_i32_23 = arith.constant 2 : i32
      %26 = arith.muli %c2_i32_23, %arg6 : i32
      %c1_i32_24 = arith.constant 1 : i32
      %27 = arith.addi %26, %c1_i32_24 : i32
      %c0_25 = arith.constant 0 : index
      %28 = arith.index_cast %27 : i32 to index
      %c0_26 = arith.constant 0 : index
      %c0_27 = arith.constant 0 : index
      %29 = vector.load %arg1[%c0_25, %28, %c0_26, %c0_27] : memref<1x6x3x128xbf16, #tpu.memory_space<vmem>>, vector<1x1x2x128xbf16>
      %30 = vector.shape_cast %29 : vector<1x1x2x128xbf16> to vector<2x128xbf16>
      %c3 = arith.constant 3 : index
      %c0_28 = arith.constant 0 : index
      %c0_29 = arith.constant 0 : index
      %31 = vector.load %arg3[%c3, %c0_28, %c0_29] : memref<9x128x128xbf16, #tpu.memory_space<vmem>>, vector<1x128x128xbf16>
      %32 = vector.shape_cast %31 : vector<1x128x128xbf16> to vector<128x128xbf16>
      %cst_30 = arith.constant dense<0.000000e+00> : vector<2x128xf32>
      %33 = tpu.matmul %30, %32, %cst_30 {dimension_numbers = #tpu.dot_dimension_numbers<[1], [0], [0], [1], [0, 0, 1, 1], [], []>} : vector<2x128xbf16>, vector<128x128xbf16>, vector<2x128xf32> -> vector<2x128xf32>
      %34 = arith.addf %25, %33 : vector<2x128xf32>
      %c0_31 = arith.constant 0 : index
      %35 = arith.index_cast %27 : i32 to index
      %c0_32 = arith.constant 0 : index
      %c0_33 = arith.constant 0 : index
      %36 = vector.load %arg2[%c0_31, %35, %c0_32, %c0_33] : memref<1x6x3x128xbf16, #tpu.memory_space<vmem>>, vector<1x1x2x128xbf16>
      %37 = vector.shape_cast %36 : vector<1x1x2x128xbf16> to vector<2x128xbf16>
      %c4 = arith.constant 4 : index
      %c0_34 = arith.constant 0 : index
      %c0_35 = arith.constant 0 : index
      %38 = vector.load %arg3[%c4, %c0_34, %c0_35] : memref<9x128x128xbf16, #tpu.memory_space<vmem>>, vector<1x128x128xbf16>
      %39 = vector.shape_cast %38 : vector<1x128x128xbf16> to vector<128x128xbf16>
      %cst_36 = arith.constant dense<0.000000e+00> : vector<2x128xf32>
      %40 = tpu.matmul %37, %39, %cst_36 {dimension_numbers = #tpu.dot_dimension_numbers<[1], [0], [0], [1], [0, 0, 1, 1], [], []>} : vector<2x128xbf16>, vector<128x128xbf16>, vector<2x128xf32> -> vector<2x128xf32>
      %41 = arith.addf %34, %40 : vector<2x128xf32>
      %c0_37 = arith.constant 0 : index
      %42 = arith.index_cast %27 : i32 to index
      %c1_38 = arith.constant 1 : index
      %c0_39 = arith.constant 0 : index
      %43 = vector.load %arg1[%c0_37, %42, %c1_38, %c0_39] : memref<1x6x3x128xbf16, #tpu.memory_space<vmem>>, vector<1x1x2x128xbf16>
      %44 = vector.shape_cast %43 : vector<1x1x2x128xbf16> to vector<2x128xbf16>
      %c5 = arith.constant 5 : index
      %c0_40 = arith.constant 0 : index
      %c0_41 = arith.constant 0 : index
      %45 = vector.load %arg3[%c5, %c0_40, %c0_41] : memref<9x128x128xbf16, #tpu.memory_space<vmem>>, vector<1x128x128xbf16>
      %46 = vector.shape_cast %45 : vector<1x128x128xbf16> to vector<128x128xbf16>
      %cst_42 = arith.constant dense<0.000000e+00> : vector<2x128xf32>
      %47 = tpu.matmul %44, %46, %cst_42 {dimension_numbers = #tpu.dot_dimension_numbers<[1], [0], [0], [1], [0, 0, 1, 1], [], []>} : vector<2x128xbf16>, vector<128x128xbf16>, vector<2x128xf32> -> vector<2x128xf32>
      %48 = arith.addf %41, %47 : vector<2x128xf32>
      %c2_i32_43 = arith.constant 2 : i32
      %49 = arith.muli %c2_i32_43, %arg6 : i32
      %c2_i32_44 = arith.constant 2 : i32
      %50 = arith.addi %49, %c2_i32_44 : i32
      %c0_45 = arith.constant 0 : index
      %51 = arith.index_cast %50 : i32 to index
      %c0_46 = arith.constant 0 : index
      %c0_47 = arith.constant 0 : index
      %52 = vector.load %arg1[%c0_45, %51, %c0_46, %c0_47] : memref<1x6x3x128xbf16, #tpu.memory_space<vmem>>, vector<1x1x2x128xbf16>
      %53 = vector.shape_cast %52 : vector<1x1x2x128xbf16> to vector<2x128xbf16>
      %c6 = arith.constant 6 : index
      %c0_48 = arith.constant 0 : index
      %c0_49 = arith.constant 0 : index
      %54 = vector.load %arg3[%c6, %c0_48, %c0_49] : memref<9x128x128xbf16, #tpu.memory_space<vmem>>, vector<1x128x128xbf16>
      %55 = vector.shape_cast %54 : vector<1x128x128xbf16> to vector<128x128xbf16>
      %cst_50 = arith.constant dense<0.000000e+00> : vector<2x128xf32>
      %56 = tpu.matmul %53, %55, %cst_50 {dimension_numbers = #tpu.dot_dimension_numbers<[1], [0], [0], [1], [0, 0, 1, 1], [], []>} : vector<2x128xbf16>, vector<128x128xbf16>, vector<2x128xf32> -> vector<2x128xf32>
      %57 = arith.addf %48, %56 : vector<2x128xf32>
      %c0_51 = arith.constant 0 : index
      %58 = arith.index_cast %50 : i32 to index
      %c0_52 = arith.constant 0 : index
      %c0_53 = arith.constant 0 : index
      %59 = vector.load %arg2[%c0_51, %58, %c0_52, %c0_53] : memref<1x6x3x128xbf16, #tpu.memory_space<vmem>>, vector<1x1x2x128xbf16>
      %60 = vector.shape_cast %59 : vector<1x1x2x128xbf16> to vector<2x128xbf16>
      %c7 = arith.constant 7 : index
      %c0_54 = arith.constant 0 : index
      %c0_55 = arith.constant 0 : index
      %61 = vector.load %arg3[%c7, %c0_54, %c0_55] : memref<9x128x128xbf16, #tpu.memory_space<vmem>>, vector<1x128x128xbf16>
      %62 = vector.shape_cast %61 : vector<1x128x128xbf16> to vector<128x128xbf16>
      %cst_56 = arith.constant dense<0.000000e+00> : vector<2x128xf32>
      %63 = tpu.matmul %60, %62, %cst_56 {dimension_numbers = #tpu.dot_dimension_numbers<[1], [0], [0], [1], [0, 0, 1, 1], [], []>} : vector<2x128xbf16>, vector<128x128xbf16>, vector<2x128xf32> -> vector<2x128xf32>
      %64 = arith.addf %57, %63 : vector<2x128xf32>
      %c0_57 = arith.constant 0 : index
      %65 = arith.index_cast %50 : i32 to index
      %c1_58 = arith.constant 1 : index
      %c0_59 = arith.constant 0 : index
      %66 = vector.load %arg1[%c0_57, %65, %c1_58, %c0_59] : memref<1x6x3x128xbf16, #tpu.memory_space<vmem>>, vector<1x1x2x128xbf16>
      %67 = vector.shape_cast %66 : vector<1x1x2x128xbf16> to vector<2x128xbf16>
      %c8 = arith.constant 8 : index
      %c0_60 = arith.constant 0 : index
      %c0_61 = arith.constant 0 : index
      %68 = vector.load %arg3[%c8, %c0_60, %c0_61] : memref<9x128x128xbf16, #tpu.memory_space<vmem>>, vector<1x128x128xbf16>
      %69 = vector.shape_cast %68 : vector<1x128x128xbf16> to vector<128x128xbf16>
      %cst_62 = arith.constant dense<0.000000e+00> : vector<2x128xf32>
      %70 = tpu.matmul %67, %69, %cst_62 {dimension_numbers = #tpu.dot_dimension_numbers<[1], [0], [0], [1], [0, 0, 1, 1], [], []>} : vector<2x128xbf16>, vector<128x128xbf16>, vector<2x128xf32> -> vector<2x128xf32>
      %71 = arith.addf %64, %70 : vector<2x128xf32>
      %72 = vector.broadcast %0 : vector<1x128xf32> to vector<2x128xf32>
      %73 = arith.addf %71, %72 : vector<2x128xf32>
      %cst_63 = arith.constant 0.000000e+00 : f32
      %74 = vector.broadcast %cst_63 : f32 to vector<2x128xf32>
      %75 = arith.maximumf %73, %74 : vector<2x128xf32>
      %76 = arith.truncf %75 : vector<2x128xf32> to vector<2x128xbf16>
      %c0_64 = arith.constant 0 : index
      %77 = arith.index_cast %arg6 : i32 to index
      %c0_65 = arith.constant 0 : index
      %c0_66 = arith.constant 0 : index
      %78 = vector.load %arg5[%c0_64, %77, %c0_65, %c0_66] : memref<1x2x2x128xbf16, #tpu.memory_space<vmem>>, vector<1x1x2x128xbf16>
      %79 = vector.shape_cast %78 : vector<1x1x2x128xbf16> to vector<2x128xbf16>
      %80 = vector.shape_cast %76 : vector<2x128xbf16> to vector<1x1x2x128xbf16>
      tpu.vector_store %arg5[%c0_64, %77, %c0_65, %c0_66], %80 {strides = array<i32>} : memref<1x2x2x128xbf16, #tpu.memory_space<vmem>>, vector<1x1x2x128xbf16>,
    }
    %c2_i32_1 = arith.constant 2 : i32
    return
  }
  func.func @transform_0(%arg0: i32) -> (i32, i32, i32, i32) {
    %c0_i32 = arith.constant 0 : i32
    %c0_i32_0 = arith.constant 0 : i32
    %c0_i32_1 = arith.constant 0 : i32
    %c0_i32_2 = arith.constant 0 : i32
    return %arg0, %c0_i32, %c0_i32_0, %c0_i32_1 : i32, i32, i32, i32
  }
  func.func @transform_1(%arg0: i32) -> (i32, i32, i32, i32) {
    %c0_i32 = arith.constant 0 : i32
    %c0_i32_0 = arith.constant 0 : i32
    %c0_i32_1 = arith.constant 0 : i32
    %c0_i32_2 = arith.constant 0 : i32
    return %arg0, %c0_i32, %c0_i32_0, %c0_i32_1 : i32, i32, i32, i32
  }
  func.func @transform_2(%arg0: i32) -> (i32, i32, i32) {
    %c0_i32 = arith.constant 0 : i32
    %c0_i32_0 = arith.constant 0 : i32
    %c0_i32_1 = arith.constant 0 : i32
    %c0_i32_2 = arith.constant 0 : i32
    return %c0_i32, %c0_i32_0, %c0_i32_1 : i32, i32, i32
  }
  func.func @transform_3(%arg0: i32) -> (i32, i32) {
    %c0_i32 = arith.constant 0 : i32
    %c0_i32_0 = arith.constant 0 : i32
    %c0_i32_1 = arith.constant 0 : i32
    return %c0_i32, %c0_i32_0 : i32, i32
  }
  func.func @transform_4(%arg0: i32) -> (i32, i32, i32, i32) {
    %c0_i32 = arith.constant 0 : i32
    %c0_i32_0 = arith.constant 0 : i32
    %c0_i32_1 = arith.constant 0 : i32
    %c0_i32_2 = arith.constant 0 : i32
    return %arg0, %c0_i32, %c0_i32_0, %c0_i32_1 : i32, i32, i32, i32
  }
}

</mosaic_0001>

<bundles_post_ra>
// kernel: flexible_image_encoder.7
= control target key start
LH: loop header
LB: loop body
LE: loop exit
PB: predicated region body
PF: predicated region fallthrough
CT: control target
= control target key end

     0   :  { %v24_v3 = vlaneseq  ;;  %v273_v4 = vmov 0.0|0.0   ;;  %v274_v7 = vmov 0.0   ;;  %vm275_vm0 = vmmov 0   ;;  %s374_s0 = inlined_call_operand.vmem [shape: bf16[2,4,128], index: 0, kind: input, shape index: {}]   ;;  %s375_s1 = inlined_call_operand.vmem [shape: f32[128,128], index: 1, kind: input, shape index: {}]   ;;  %s376_s2 = inlined_call_operand.vmem [shape: f32[1,128], index: 2, kind: input, shape index: {}]   ;;  %s377_s3 = inlined_call_operand.hbm [shape: f32[2,128], index: 3, kind: output, shape index: {}]  }
   0x1   :  { %v60_v0 = vld [vmem:[%s375_s1] sm:$0xff]  ;;  %v61_v1 = vld [vmem:[%s375_s1 + $0x8] sm:$0xff]  ;;  %v62_v2 = vld [vmem:[%s375_s1 + $0x10] sm:$0xff]  ;;  %221 = vmatprep.subr.bf16.mxu0 %v273_v4  ;;  %19 = vst [vmem:[#allocation2] sm:$0x3] %v274_v7  ;;  %218 = vmatprep.mubr.msk.f32.mxu0 %vm275_vm0, %v274_v7  ;;  %vm33_vm2 = vcmask 1043456  }
   0x2   :  { %v222_v5 = vpack.c.bf16 %v61_v1, %v60_v0  ;;  %v63_v6 = vld [vmem:[%s375_s1 + $0x18] sm:$0xff]  ;;  %v25_v8 = vshrl.u32 %v24_v3, 7  ;;  %v64_v10 = vld [vmem:[%s375_s1 + $0x20] sm:$0xff]  ;;  %v65_v11 = vld [vmem:[%s375_s1 + $0x28] sm:$0xff] }
   0x3   :  { %v225_v9 = vpack.c.bf16 %v63_v6, %v62_v2  ;;  %v20_v12 = vld [vmem:[%s374_s0] sm:$0x3]  ;;  %v21_v13 = vld [vmem:[%s374_s0 + $0x2] sm:$0x3] }
   0x4   :  { %223 = vmatpush3.bf16.msra.mxu0 %v222_v5  ;;  %vm29_vm1 = vcmp.lt.s32.totalorder %v25_v8, 4  ;;  %v22_v14 = vunpack.c.l.bf16 %v20_v12  ;;  %v23_v15 = vunpack.c.l.bf16 %v21_v13 }
   0x5   :  { %224 = vmatprep.subr.bf16.mxu0 %v273_v4 }
   0x6   :  { %8 = vsyncpa [#allocation4], 0  ;;  %v228_v16 = vpack.c.bf16 %v65_v11, %v64_v10  ;;  %v66_v17 = vld [vmem:[%s375_s1 + $0x30] sm:$0xff]  ;;  %v67_v18 = vld [vmem:[%s375_s1 + $0x38] sm:$0xff]  ;;  %v30_v19 = vsel %vm29_vm1, %v22_v14, 0.0  ;;  %v31_v20 = vsel %vm29_vm1, %v23_v15, 0.0 }
   0x7   :  { %v34_v21 = vsel %vm33_vm2, %v30_v19, 0.0  ;;  %v41_v22 = vsel %vm33_vm2, %v31_v20, 0.0  ;;  %v231_v25 = vpack.c.bf16 %v67_v18, %v66_v17  ;;  %v68_v26 = vld [vmem:[%s375_s1 + $0x40] sm:$0xff]  ;;  %v69_v27 = vld [vmem:[%s375_s1 + $0x48] sm:$0xff]  ;;  %v70_v33 = vld [vmem:[%s375_s1 + $0x50] sm:$0xff]  ;;  %vm50_vm3 = vcmask 1041409  }
   0x8   :  { %226 = vmatpush3.bf16.msra.mxu0 %v225_v9  ;;  %v35_v23 = vrot.slane %v34_v21, 4  ;;  %v42_v24 = vrot.slane %v41_v22, 4  ;;  %v234_v32 = vpack.c.bf16 %v69_v27, %v68_v26  ;;  %v71_v34 = vld [vmem:[%s375_s1 + $0x58] sm:$0xff]  ;;  %v72_v40 = vld [vmem:[%s375_s1 + $0x60] sm:$0xff]  ;;  %v73_v41 = vld [vmem:[%s375_s1 + $0x68] sm:$0xff]  ;;  %s276_s22 = smov [#allocation3]  }
   0x9   :  { %227 = vmatprep.subr.bf16.mxu0 %v273_v4  ;;  %v237_v39 = vpack.c.bf16 %v71_v34, %v70_v33  ;;  %v32_v42 = vld [vmem:[#allocation2] sm:$0x3]  ;;  %v240_v46 = vpack.c.bf16 %v73_v41, %v72_v40  ;;  %v74_v48 = vld [vmem:[%s375_s1 + $0x70] sm:$0xff]  ;;  %v75_v49 = vld [vmem:[%s375_s1 + $0x78] sm:$0xff]  ;;  %s160_s23 = sshll.u32 %s276_s22, 4  ;;  %s161_s23 = int_to_ptr.vmem [resolvable:$true] %s160_s23 }
   0xa   :  { %v36_v28 = vadd.f32 %v35_v23, %v34_v21  ;;  %v43_v29 = vadd.f32 %v42_v24, %v41_v22  ;;  %v243_v50 = vpack.c.bf16 %v75_v49, %v74_v48  ;;  %v168_v53 = vld [vmem:[%s376_s2] ss:$0 sm:$0xff]  ;;  %s249_s1 = scalar_lea.vmem %s161_s23, 32  ;;  %p254_p1 = scmp.lt.s32.totalorder %s161_s23, %s161_s23 }
   0xb   :  { %p250_p0 = scmp.ne.s32.totalorder %s161_s23, %s249_s1  ;;  %p255_p2 = scmp.lt.s32.totalorder %s249_s1, %s249_s1 }
   0xc   :  { %229 = vmatpush3.bf16.msra.mxu0 %v228_v16  ;;  %v37_v30 = vrot.slane %v36_v28, 2  ;;  %v44_v31 = vrot.slane %v43_v29, 2 }
   0xd   :  { %230 = vmatprep.subr.bf16.mxu0 %v273_v4  ;;  %p256_p3 = por %p255_p2, %p254_p1 }
   0xe   :  { %v38_v35 = vadd.f32 %v37_v30, %v36_v28  ;;  %v45_v36 = vadd.f32 %v44_v31, %v43_v29 }
   0xf   :  { %p257_p4 = pnand %p256_p3, %p250_p0 }
  0x10   :  { %232 = vmatpush3.bf16.msra.mxu0 %v231_v25  ;;  %v39_v37 = vrot.slane %v38_v35, 1  ;;  %v46_v38 = vrot.slane %v45_v36, 1 }
  0x11   :  { %233 = vmatprep.subr.bf16.mxu0 %v273_v4 }
  0x12   :  { %v40_v43 = vadd.f32 %v39_v37, %v38_v35  ;;  %v47_v44 = vadd.f32 %v46_v38, %v45_v36 }
  0x14   :  { %235 = vmatpush3.bf16.msra.mxu0 %v234_v32  ;;  %v51_v45 = vsel %vm50_vm3, %v47_v44, %v40_v43 }
  0x15   :  { %236 = vmatprep.subr.bf16.mxu0 %v273_v4  ;;  %v53_v47 = vadd.f32 %v51_v45, %v32_v42 }
  0x17   :  { %54 = vst [vmem:[#allocation2] sm:$0x3] %v53_v47 }
  0x18   :  { %238 = vmatpush3.bf16.msra.mxu0 %v237_v39 }
  0x19   :  { %239 = vmatprep.subr.bf16.mxu0 %v273_v4 }
  0x1c   :  { %241 = vmatpush3.bf16.msra.mxu0 %v240_v46 }
  0x1d   :  { %242 = vmatprep.subr.bf16.mxu0 %v273_v4 }
  0x1e   :  { %v58_v51 = vld [vmem:[#allocation2] sm:$0x3] }
  0x1f   :  { %v59_v52 = vmul.f32 0.25, %v58_v51 }
  0x20   :  { %244 = vmatpush3.bf16.msra.mxu0 %v243_v50 }
  0x23   :  { %219 = vmatmul.mubr.f32.vlgmr.msra.gmra.mrb[0].mxu0 %v59_v52 }
  0xf6   :  { %v149_v54 = vpop.f32.mrb[0].mxu0 }
  0xf7   :  { %v150_v55 = vadd.f32 %v168_v53, %v149_v54  ;;  %v220_v56 = vpop.f32.mrb[1].mxu0 }
  0xf9   :  { %153 = vst [vmem:[#allocation3] sm:$0x3] %v150_v55 }
  0xfa   :  { %260 = shalt.err (!%p257_p4)
}
  0xfb   :  { %s261_s26 = scalar_lea.hbm %s377_s3, 32 }
  0xfc   :  { %p262_p5 = scmp.ne.s32.totalorder %s377_s3, %s261_s26  ;;  %p265_p6 = scmp.lt.u32.totalorder %s261_s26, %s377_s3 }
  0xfe   :  { %p267_p7 = pnand %p265_p6, %p262_p5 }
 0x100   :  { %270 = shalt.err (!%p267_p7)
}
 0x101   :  { %163 = dma.vmem_to_hbm [thread:$0]  %s161_s23, 32, %s377_s3, [#allocation4]  }
 0x102   :  { %271 = dma.done.wait [#allocation4], 32  }
 0x103   :  { %272 = vsyncadd [#allocation4], 4294967264 }
 0x104   :  { %167 = vsyncpa [#allocation4], 1 }

// kernel: flexible_image_encoder.4
= control target key start
LH: loop header
LB: loop body
LE: loop exit
PB: predicated region body
PF: predicated region fallthrough
CT: control target
= control target key end

     0   :  { %s1036_s15 = smov 0   ;;  %s1166_s0 = inlined_call_operand.vmem [shape: bf16[2,18,9,4], index: 0, kind: input, shape index: {}]   ;;  %s1167_s1 = inlined_call_operand.vmem [shape: bf16[2,18,9,4], index: 1, kind: input, shape index: {}]   ;;  %s1168_s2 = inlined_call_operand.vmem [shape: bf16[9,4,128], index: 2, kind: input, shape index: {}]   ;;  %s1169_s3 = inlined_call_operand.vmem [shape: f32[1,128], index: 3, kind: input, shape index: {}]   ;;  %s1170_s4 = inlined_call_operand.vmem [shape: bf16[2,8,8,128], index: 4, kind: output, shape index: {}]  }
   0x1 LB: > { %s838_s16 = sadd.s32 4294967295, %s1003_s15   ;;  %p842_p0 = scmp.ge.s32.totalorder %s1003_s15, 1  ;;  %s1003_s15 = sphi %s1036_s15, %s14_s15  }
   0x2   : > { %p172_p1 = scmp.lt.s32.totalorder %s1003_s15, 3 }
   0x4   : > { %p173_p2 = pnand %p842_p0, %p172_p1 }
   0x5   : > { %p203_p3 = scmp.lt.s32.totalorder (!%p173_p2), %s838_s16, 1  ;;  %v1047_v0 = vld [vmem:[%s1169_s3] ss:$0 sm:$0xff] (!%p173_p2)  ;;  %s1064_s30 = smov (!%p173_p2), 0  }
   0x6   : > { %176 = sbr.rel (%p173_p2) target bundleno = 275 (0x113), region = 36 }
   0xd   : > { %s1172_s16 = smov (!%p203_p3, %s838_s16), 1 }
   0xe   : > { %s971_s19 = smul.u32 144, %s1172_s16  ;;  %s891_s20 = sshll.u32 %s1172_s16, 5 }
   0xf   : > { %s1052_s23 = scalar_lea.vmem %s1170_s4, %s891_s20 }
  0x10   : > { %s1057_s26 = scalar_lea.vmem %s1166_s0, %s971_s19  ;;  %s1062_s29 = scalar_lea.vmem %s1167_s1, %s971_s19 }
  0x11 LB: >> { %v851_v1 = vld [vmem:[%s1168_s2 + $0x2] sm:$0x3]  ;;  %vm241_vm0 = vcmask 1041408   ;;  %v231_v2 = vld [vmem:[%s1168_s2] sm:$0x3]  ;;  %v1009_v3 = vmov 0.0   ;;  %s1007_s30 = sphi %s1064_s30, %s225_s30  }
  0x12   : >> { %917 = vmatprep.subr.bf16.mxu0 %v1009_v3  ;;  %v243_v4 = vsel %vm241_vm0, %v851_v1, 0  ;;  %923 = vmatprep.subr.bf16.mxu1 %v1009_v3  ;;  %v289_v5 = vsel %vm241_vm0, %v231_v2, 0  ;;  %v854_v6 = vld [vmem:[%s1168_s2 + $0x4] sm:$0x3]  ;;  %s893_s11 = sshll.u32 %s1007_s30, 4  ;;  %vm237_vm1 = vcmask 31744  }
  0x13   : >> { %918 = vmatpush3.bf16.msra.mxu0 %v243_v4  ;;  %924 = vmatpush3.bf16.msra.mxu1 %v289_v5  ;;  %v860_v7 = vld [vmem:[%s1168_s2 + $0x6] sm:$0x3]  ;;  %vm1010_vm2 = vmmov 0   ;;  %s1089_s14 = scalar_lea.vmem %s1057_s26, %s893_s11  ;;  %s1092_s16 = scalar_lea.vmem %s1062_s29, %s893_s11  ;;  %v351_v8 = vsel %vm241_vm0, %v854_v6, 0  ;;  %v865_v16 = vld [vmem:[%s1168_s2 + $0x8] sm:$0x3] }
  0x14   : >> { %919 = vmatprep.mubr.msk.bf16.mxu0 %vm1010_vm2, %v1009_v3  ;;  %925 = vmatprep.mubr.msk.bf16.mxu1 %vm1010_vm2, %v1009_v3  ;;  %v405_v9 = vsel %vm241_vm0, %v860_v7, 0  ;;  %v234_v10 = vld [vmem:[%s1092_s16] sm:$0xf]  ;;  %v991_v15 = vld [vmem:[%s1089_s14 + $0x8] sm:$0x1f]   ;;  %v457_v22 = vsel %vm241_vm0, %v865_v16, 0 }
  0x15   : >> { %929 = vmatprep.subr.bf16.mxu0 %v1009_v3  ;;  %v230_v11 = vld [vmem:[%s1089_s14] sm:$0xf]  ;;  %935 = vmatprep.subr.bf16.mxu1 %v1009_v3  ;;  %v869_v18 = vld [vmem:[%s1168_s2 + $0xa] sm:$0x3]  ;;  %v512_v19 = vshll.u32 %v991_v15, 16  ;;  %v510_v24 = vshrl.u32 %v991_v15, 16 }
  0x16   : >> { %920 = vmatmul.mubr.msk.bf16.vlgmr.msra.gmra.mrb[0].mxu0 %vm237_vm1, %v234_v10  ;;  %926 = vmatmul.mubr.msk.bf16.vlgmr.msra.gmra.mrb[0].mxu1 %vm237_vm1, %v230_v11  ;;  %v990_v12 = vld [vmem:[%s1089_s14] sm:$0x1f]   ;;  %v859_v20 = vld [vmem:[%s1089_s14 + $0x8] sm:$0xf]  ;;  %v520_v23 = vsel %vm241_vm0, %v869_v18, 0  ;;  %s888_s5 = sshll.u32 %s1007_s30, 2 }
  0x17   : >> { %930 = vmatpush3.bf16.msra.mxu0 %v351_v8  ;;  %931 = vmatprep.mubr.msk.bf16.mxu0 %vm1010_vm2, %v1009_v3  ;;  %v341_v13 = vshrl.u32 %v990_v12, 16  ;;  %v343_v14 = vshll.u32 %v990_v12, 16  ;;  %v514_v25 = vrot.slane %v512_v19, 1  ;;  %v875_v26 = vld [vmem:[%s1168_s2 + $0xc] sm:$0x3]  ;;  %s742_s6 = scalar_lea.vmem %s1052_s23, %s888_s5  ;;  %s225_s30 = sadd.s32 1, %s1007_s30  }
  0x18   : >> { %936 = vmatpush3.bf16.msra.mxu1 %v405_v9  ;;  %941 = vmatprep.subr.bf16.mxu0 %v1009_v3  ;;  %v880_v28 = vld [vmem:[%s1168_s2 + $0xe] sm:$0x3]  ;;  %v864_v29 = vld [vmem:[%s1092_s16 + $0x8] sm:$0xf]  ;;  %v574_v30 = vsel %vm241_vm0, %v875_v26, 0  ;;  %p222_p4 = scmp.ge.s32.totalorder %s225_s30, 8  }
  0x19   : >> { %937 = vmatprep.mubr.msk.bf16.mxu1 %vm1010_vm2, %v1009_v3  ;;  %947 = vmatprep.subr.bf16.mxu1 %v1009_v3  ;;  %v345_v17 = vrot.slane %v343_v14, 1  ;;  %v515_v27 = vor.u32 %v514_v25, %v510_v24  ;;  %v626_v31 = vsel %vm241_vm0, %v880_v28, 0  ;;  %v992_v32 = vld [vmem:[%s1089_s14 + $0x10] sm:$0x1f]  }
  0x1a   : >> { %v884_v33 = vld [vmem:[%s1168_s2 + $0x10] sm:$0x3]  ;;  %v681_v34 = vshll.u32 %v992_v32, 16  ;;  %v679_v38 = vshrl.u32 %v992_v32, 16 }
  0x1b   : >> { %v346_v21 = vor.u32 %v345_v17, %v341_v13  ;;  %v874_v35 = vld [vmem:[%s1089_s14 + $0x10] sm:$0xf]  ;;  %v689_v37 = vsel %vm241_vm0, %v884_v33, 0 }
  0x1c   : >> { %v879_v36 = vld [vmem:[%s1092_s16 + $0x10] sm:$0xf]  ;;  %v683_v39 = vrot.slane %v681_v34, 1 }
  0x1e   : >> { %932 = vmatmul.mubr.msk.bf16.vlgmr.msra.gmra.mrb[4].mxu0 %vm237_vm1, %v346_v21  ;;  %938 = vmatmul.mubr.msk.bf16.vlgmr.msra.gmra.mrb[4].mxu1 %vm237_vm1, %v859_v20  ;;  %v684_v40 = vor.u32 %v683_v39, %v679_v38 }
  0x1f   : >> { %942 = vmatpush3.bf16.msra.mxu0 %v457_v22  ;;  %943 = vmatprep.mubr.msk.bf16.mxu0 %vm1010_vm2, %v1009_v3 }
  0x20   : >> { %948 = vmatpush3.bf16.msra.mxu1 %v520_v23  ;;  %953 = vmatprep.subr.bf16.mxu0 %v1009_v3 }
  0x21   : >> { %949 = vmatprep.mubr.msk.bf16.mxu1 %vm1010_vm2, %v1009_v3  ;;  %959 = vmatprep.subr.bf16.mxu1 %v1009_v3 }
  0x26   : >> { %944 = vmatmul.mubr.msk.bf16.vlgmr.msra.gmra.mrb[8].mxu0 %vm237_vm1, %v864_v29  ;;  %950 = vmatmul.mubr.msk.bf16.vlgmr.msra.gmra.mrb[8].mxu1 %vm237_vm1, %v515_v27 }
  0x27   : >> { %954 = vmatpush3.bf16.msra.mxu0 %v574_v30  ;;  %955 = vmatprep.mubr.msk.bf16.mxu0 %vm1010_vm2, %v1009_v3 }
  0x28   : >> { %960 = vmatpush3.bf16.msra.mxu1 %v626_v31  ;;  %965 = vmatprep.subr.bf16.mxu0 %v1009_v3 }
  0x29   : >> { %961 = vmatprep.mubr.msk.bf16.mxu1 %vm1010_vm2, %v1009_v3 }
  0x2e   : >> { %956 = vmatmul.mubr.msk.bf16.vlgmr.msra.gmra.mrb[12].mxu0 %vm237_vm1, %v874_v35  ;;  %962 = vmatmul.mubr.msk.bf16.vlgmr.msra.gmra.mrb[12].mxu1 %vm237_vm1, %v879_v36 }
  0x2f   : >> { %966 = vmatpush3.bf16.msra.mxu0 %v689_v37  ;;  %967 = vmatprep.mubr.msk.bf16.mxu0 %vm1010_vm2, %v1009_v3 }
  0x36   : >> { %968 = vmatmul.mubr.msk.bf16.vlgmr.msra.gmra.mrb[16].mxu0 %vm237_vm1, %v684_v40 }
  0xe9   : >> { %v279_v41 = vpop.f32.mrb[0].mxu0  ;;  %v325_v42 = vpop.f32.mrb[0].mxu1 }
  0xea   : >> { %v921_v43 = vpop.f32.mrb[1].mxu0  ;;  %v326_v44 = vadd.f32 %v325_v42, %v279_v41  ;;  %v927_v45 = vpop.f32.mrb[1].mxu1 }
  0xeb   : >> { %v282_v46 = vpop.f32.mrb[2].mxu0  ;;  %v328_v47 = vpop.f32.mrb[2].mxu1 }
  0xec   : >> { %v922_v48 = vpop.f32.mrb[3].mxu0  ;;  %v928_v49 = vpop.f32.mrb[3].mxu1 }
  0xf1   : >> { %v387_v50 = vpop.f32.mrb[4].mxu0  ;;  %v441_v51 = vpop.f32.mrb[4].mxu1 }
  0xf2   : >> { %v393_v52 = vadd.f32 %v387_v50, %v326_v44  ;;  %v933_v53 = vpop.f32.mrb[5].mxu0  ;;  %v939_v54 = vpop.f32.mrb[5].mxu1 }
  0xf3   : >> { %v390_v55 = vpop.f32.mrb[6].mxu0  ;;  %v444_v56 = vpop.f32.mrb[6].mxu1 }
  0xf4   : >> { %v447_v57 = vadd.f32 %v441_v51, %v393_v52  ;;  %v934_v58 = vpop.f32.mrb[7].mxu0  ;;  %v940_v59 = vpop.f32.mrb[7].mxu1 }
  0xf9   : >> { %v493_v60 = vpop.f32.mrb[8].mxu0  ;;  %v556_v61 = vpop.f32.mrb[8].mxu1 }
  0xfa   : >> { %v499_v62 = vadd.f32 %v493_v60, %v447_v57  ;;  %v945_v63 = vpop.f32.mrb[9].mxu0  ;;  %v951_v1 = vpop.f32.mrb[9].mxu1 }
  0xfb   : >> { %v496_v2 = vpop.f32.mrb[10].mxu0  ;;  %v559_v3 = vpop.f32.mrb[10].mxu1 }
  0xfc   : >> { %v562_v4 = vadd.f32 %v556_v61, %v499_v62  ;;  %v946_v5 = vpop.f32.mrb[11].mxu0  ;;  %v952_v6 = vpop.f32.mrb[11].mxu1 }
 0x101   : >> { %v610_v7 = vpop.f32.mrb[12].mxu0  ;;  %v662_v8 = vpop.f32.mrb[12].mxu1 }
 0x102   : >> { %v616_v9 = vadd.f32 %v610_v7, %v562_v4  ;;  %v957_v10 = vpop.f32.mrb[13].mxu0  ;;  %v963_v11 = vpop.f32.mrb[13].mxu1 }
 0x103   : >> { %v613_v12 = vpop.f32.mrb[14].mxu0  ;;  %v665_v13 = vpop.f32.mrb[14].mxu1 }
 0x104   : >> { %v668_v14 = vadd.f32 %v662_v8, %v616_v9  ;;  %v958_v15 = vpop.f32.mrb[15].mxu0  ;;  %v964_v16 = vpop.f32.mrb[15].mxu1 }
 0x109   : >> { %v725_v17 = vpop.f32.mrb[16].mxu0 }
 0x10a   : >> { %v731_v18 = vadd.f32 %v725_v17, %v668_v14  ;;  %v969_v19 = vpop.f32.mrb[17].mxu0 }
 0x10b   : >> { %v728_v20 = vpop.f32.mrb[18].mxu0 }
 0x10c   : >> { %v738_v21 = vadd.f32 %v1047_v0, %v731_v18  ;;  %v970_v22 = vpop.f32.mrb[19].mxu0  ;;  %224 = sbr.rel (!%p222_p4) target bundleno = 17 (0x11), region = 91 }
 0x10e   : >> { %v739_v23 = vmax.f32 %v738_v21, 0.0 }
 0x110   : >> { %v740_v24 = vpack.c.bf16 %v739_v23, %v739_v23 }
 0x112   : >> { %743 = vst [vmem:[%s742_s6] sm:$0xf] %v740_v24 }
 0x113 PF: > { %s14_s15 = sadd.s32 1, %s1003_s15  }
 0x114   : > { %p11_p5 = scmp.ge.s32.totalorder %s14_s15, 4  }
 0x116   :  { %13 = sbr.rel (!%p11_p5) target bundleno = 1 (0x1), region = 102 }

// kernel: flexible_image_encoder.5
= control target key start
LH: loop header
LB: loop body
LE: loop exit
PB: predicated region body
PF: predicated region fallthrough
CT: control target
= control target key end

     0   :  { %s1978_s15 = smov 0   ;;  %s2342_s0 = inlined_call_operand.vmem [shape: bf16[2,10,5,128], index: 0, kind: input, shape index: {}]   ;;  %s2343_s1 = inlined_call_operand.vmem [shape: bf16[2,10,5,128], index: 1, kind: input, shape index: {}]   ;;  %s2344_s2 = inlined_call_operand.vmem [shape: bf16[9,128,128], index: 2, kind: input, shape index: {}]   ;;  %s2345_s3 = inlined_call_operand.vmem [shape: f32[1,128], index: 3, kind: input, shape index: {}]   ;;  %s2346_s4 = inlined_call_operand.vmem [shape: bf16[2,4,4,128], index: 4, kind: output, shape index: {}]  }
   0x1 LB: > { %s1340_s16 = sadd.s32 4294967295, %s1945_s15   ;;  %p1344_p0 = scmp.ge.s32.totalorder %s1945_s15, 1  ;;  %s1945_s15 = sphi %s1978_s15, %s14_s15  }
   0x2   : > { %p172_p1 = scmp.lt.s32.totalorder %s1945_s15, 3 }
   0x4   : > { %p173_p2 = pnand %p1344_p0, %p172_p1 }
   0x5   : > { %p203_p3 = scmp.lt.s32.totalorder (!%p173_p2), %s1340_s16, 1  ;;  %v1989_v0 = vld [vmem:[%s2345_s3] ss:$0 sm:$0xff] (!%p173_p2)  ;;  %s2006_s30 = smov (!%p173_p2), 0  }
   0x6   : > { %176 = sbr.rel (%p173_p2) target bundleno = 399 (0x18f), region = 36 }
   0xd   : > { %s2348_s16 = smov (!%p203_p3, %s1340_s16), 1 }
   0xe   : > { %s1841_s19 = smul.u32 40, %s2348_s16  ;;  %s1573_s20 = sshll.u32 %s2348_s16, 3 }
   0xf   : > { %s1994_s23 = scalar_lea.vmem %s2346_s4, %s1573_s20 }
  0x10   : > { %s1999_s26 = scalar_lea.vmem %s2342_s0, %s1841_s19  ;;  %s2004_s29 = scalar_lea.vmem %s2343_s1, %s1841_s19 }
  0x11 LB: >> { %v1860_v1 = vld [vmem:[%s2344_s2 + $0x40] sm:$0xff]   ;;  %v1951_v2 = vmov 0.0   ;;  %v1862_v4 = vld [vmem:[%s2344_s2 + $0x48] sm:$0xff]   ;;  %vm1952_vm0 = vmmov 0   ;;  %v1864_v6 = vld [vmem:[%s2344_s2 + $0x50] sm:$0xff]   ;;  %s1574_s10 = sshll.u32 %s1949_s30, 3  ;;  %s1949_s30 = sphi %s2006_s30, %s225_s30  }
  0x12   : >> { %1661 = vmatprep.subr.bf16.mxu0 %v1951_v2  ;;  %1681 = vmatprep.subr.bf16.mxu1 %v1951_v2  ;;  %v1861_v3 = vld [vmem:[%s2344_s2] sm:$0xff]   ;;  %v1863_v5 = vld [vmem:[%s2344_s2 + $0x8] sm:$0xff]   ;;  %v1865_v7 = vld [vmem:[%s2344_s2 + $0x10] sm:$0xff]   ;;  %s2073_s13 = scalar_lea.vmem %s2004_s29, %s1574_s10  ;;  %s2079_s17 = scalar_lea.vmem %s1999_s26, %s1574_s10 }
  0x13   : >> { %1662 = vmatpush3.bf16.msra.mxu0 %v1860_v1  ;;  %1677 = vmatprep.mubr.msk.bf16.mxu0 %vm1952_vm0, %v1951_v2  ;;  %v1866_v8 = vld [vmem:[%s2344_s2 + $0x58] sm:$0xff]   ;;  %v1868_v10 = vld [vmem:[%s2344_s2 + $0x60] sm:$0xff]   ;;  %v1870_v12 = vld [vmem:[%s2344_s2 + $0x68] sm:$0xff]   ;;  %s1570_s14 = sshll.u32 %s1949_s30, 1  ;;  %s225_s30 = sadd.s32 1, %s1949_s30  }
  0x14   : >> { %1682 = vmatpush3.bf16.msra.mxu1 %v1861_v3  ;;  %1663 = vmatprep.subr.bf16.mxu0 %v1951_v2  ;;  %v1867_v9 = vld [vmem:[%s2344_s2 + $0x18] sm:$0xff]   ;;  %v1869_v11 = vld [vmem:[%s2344_s2 + $0x20] sm:$0xff]   ;;  %v1871_v13 = vld [vmem:[%s2344_s2 + $0x28] sm:$0xff]   ;;  %s1244_s16 = scalar_lea.vmem %s1994_s23, %s1570_s14  ;;  %p222_p4 = scmp.ge.s32.totalorder %s225_s30, 4  }
  0x15   : >> { %1683 = vmatprep.subr.bf16.mxu1 %v1951_v2  ;;  %1697 = vmatprep.mubr.msk.bf16.mxu1 %vm1952_vm0, %v1951_v2  ;;  %v1872_v14 = vld [vmem:[%s2344_s2 + $0x70] sm:$0xff]   ;;  %v1874_v16 = vld [vmem:[%s2344_s2 + $0x78] sm:$0xff]   ;;  %v248_v18 = vld [vmem:[%s2073_s13] sm:$0x3] }
  0x16   : >> { %v1873_v15 = vld [vmem:[%s2344_s2 + $0x30] sm:$0xff]   ;;  %v1875_v17 = vld [vmem:[%s2344_s2 + $0x38] sm:$0xff]   ;;  %v229_v19 = vld [vmem:[%s2079_s17] sm:$0x3] }
  0x17   : >> { %1664 = vmatpush3.bf16.msra.mxu0 %v1862_v4  ;;  %v1876_v20 = vld [vmem:[%s2344_s2 + $0x80] sm:$0xff]   ;;  %v1878_v22 = vld [vmem:[%s2344_s2 + $0x88] sm:$0xff]   ;;  %v1880_v24 = vld [vmem:[%s2344_s2 + $0x90] sm:$0xff]  }
  0x18   : >> { %1684 = vmatpush3.bf16.msra.mxu1 %v1863_v5  ;;  %1665 = vmatprep.subr.bf16.mxu0 %v1951_v2  ;;  %v1877_v21 = vld [vmem:[%s2344_s2 + $0xc0] sm:$0xff]   ;;  %v1879_v23 = vld [vmem:[%s2344_s2 + $0xc8] sm:$0xff]   ;;  %v1881_v25 = vld [vmem:[%s2344_s2 + $0xd0] sm:$0xff]  }
  0x19   : >> { %1685 = vmatprep.subr.bf16.mxu1 %v1951_v2  ;;  %v1882_v26 = vld [vmem:[%s2344_s2 + $0x98] sm:$0xff]   ;;  %v1884_v28 = vld [vmem:[%s2344_s2 + $0xa0] sm:$0xff]   ;;  %v1886_v31 = vld [vmem:[%s2344_s2 + $0xa8] sm:$0xff]  }
  0x1a   : >> { %v1883_v27 = vld [vmem:[%s2344_s2 + $0xd8] sm:$0xff]   ;;  %v1885_v29 = vld [vmem:[%s2344_s2 + $0xe0] sm:$0xff]   ;;  %v1887_v32 = vld [vmem:[%s2344_s2 + $0xe8] sm:$0xff]  }
  0x1b   : >> { %1666 = vmatpush3.bf16.msra.mxu0 %v1864_v6  ;;  %v1892_v30 = vld [vmem:[%s2079_s17] ss:$0 sps:$4 sm:$0x77]   ;;  %v1888_v33 = vld [vmem:[%s2344_s2 + $0xb0] sm:$0xff]   ;;  %v1890_v38 = vld [vmem:[%s2344_s2 + $0xb8] sm:$0xff]  }
  0x1c   : >> { %1686 = vmatpush3.bf16.msra.mxu1 %v1865_v7  ;;  %1667 = vmatprep.subr.bf16.mxu0 %v1951_v2  ;;  %v466_v34 = vshll.u32 %v1892_v30, 16  ;;  %v1889_v35 = vld [vmem:[%s2344_s2 + $0xf0] sm:$0xff]   ;;  %v464_v36 = vshrl.u32 %v1892_v30, 16  ;;  %v1891_v39 = vld [vmem:[%s2344_s2 + $0xf8] sm:$0xff]   ;;  %v1893_v41 = vld [vmem:[%s2344_s2 + $0x100] sm:$0xff]  }
  0x1d   : >> { %1687 = vmatprep.subr.bf16.mxu1 %v1951_v2  ;;  %v1411_v42 = vld [vmem:[%s2079_s17 + $0x4] sm:$0x3]  ;;  %v1895_v44 = vld [vmem:[%s2344_s2 + $0x108] sm:$0xff]   ;;  %v1897_v46 = vld [vmem:[%s2344_s2 + $0x110] sm:$0xff]  }
  0x1e   : >> { %v468_v37 = vrot.slane %v466_v34, 1  ;;  %v1894_v43 = vld [vmem:[%s2344_s2 + $0x140] sm:$0xff]   ;;  %v1896_v45 = vld [vmem:[%s2344_s2 + $0x148] sm:$0xff]   ;;  %v1898_v47 = vld [vmem:[%s2344_s2 + $0x150] sm:$0xff]  }
  0x1f   : >> { %1668 = vmatpush3.bf16.msra.mxu0 %v1866_v8  ;;  %v1899_v48 = vld [vmem:[%s2344_s2 + $0x118] sm:$0xff]   ;;  %v1901_v50 = vld [vmem:[%s2344_s2 + $0x120] sm:$0xff]   ;;  %v1903_v52 = vld [vmem:[%s2344_s2 + $0x128] sm:$0xff]  }
  0x20   : >> { %1688 = vmatpush3.bf16.msra.mxu1 %v1867_v9  ;;  %1669 = vmatprep.subr.bf16.mxu0 %v1951_v2  ;;  %v469_v40 = vor.u32 %v468_v37, %v464_v36  ;;  %v1900_v49 = vld [vmem:[%s2344_s2 + $0x158] sm:$0xff]   ;;  %v1902_v51 = vld [vmem:[%s2344_s2 + $0x160] sm:$0xff]   ;;  %v1904_v54 = vld [vmem:[%s2344_s2 + $0x168] sm:$0xff]  }
  0x21   : >> { %1689 = vmatprep.subr.bf16.mxu1 %v1951_v2  ;;  %v1910_v53 = vld [vmem:[%s2079_s17 + $0x4] ss:$0 sps:$4 sm:$0x77]   ;;  %v1905_v55 = vld [vmem:[%s2344_s2 + $0x130] sm:$0xff]   ;;  %v1907_v58 = vld [vmem:[%s2344_s2 + $0x138] sm:$0xff]  }
  0x22   : >> { %v803_v56 = vshll.u32 %v1910_v53, 16  ;;  %v1906_v57 = vld [vmem:[%s2344_s2 + $0x170] sm:$0xff]   ;;  %v801_v59 = vshrl.u32 %v1910_v53, 16  ;;  %v1908_v61 = vld [vmem:[%s2344_s2 + $0x178] sm:$0xff]   ;;  %v1438_v62 = vld [vmem:[%s2073_s13 + $0x4] sm:$0x3] }
  0x23   : >> { %1670 = vmatpush3.bf16.msra.mxu0 %v1868_v10  ;;  %v1909_v63 = vld [vmem:[%s2344_s2 + $0x180] sm:$0xff]   ;;  %v1912_v4 = vld [vmem:[%s2344_s2 + $0x188] sm:$0xff]   ;;  %v1914_v6 = vld [vmem:[%s2344_s2 + $0x190] sm:$0xff]  }
  0x24   : >> { %1690 = vmatpush3.bf16.msra.mxu1 %v1869_v11  ;;  %1671 = vmatprep.subr.bf16.mxu0 %v1951_v2  ;;  %v805_v60 = vrot.slane %v803_v56, 1  ;;  %v1911_v3 = vld [vmem:[%s2344_s2 + $0x1c0] sm:$0xff]   ;;  %v1913_v5 = vld [vmem:[%s2344_s2 + $0x1c8] sm:$0xff]   ;;  %v1915_v7 = vld [vmem:[%s2344_s2 + $0x1d0] sm:$0xff]  }
  0x25   : >> { %1691 = vmatprep.subr.bf16.mxu1 %v1951_v2  ;;  %v1916_v8 = vld [vmem:[%s2344_s2 + $0x198] sm:$0xff]   ;;  %v1918_v10 = vld [vmem:[%s2344_s2 + $0x1a0] sm:$0xff]  }
  0x26   : >> { %v806_v1 = vor.u32 %v805_v60, %v801_v59  ;;  %v1917_v9 = vld [vmem:[%s2344_s2 + $0x1d8] sm:$0xff]   ;;  %v1919_v11 = vld [vmem:[%s2344_s2 + $0x1e0] sm:$0xff]  }
  0x27   : >> { %1672 = vmatpush3.bf16.msra.mxu0 %v1870_v12  ;;  %v1920_v12 = vld [vmem:[%s2344_s2 + $0x1a8] sm:$0xff]  }
  0x28   : >> { %1692 = vmatpush3.bf16.msra.mxu1 %v1871_v13  ;;  %1673 = vmatprep.subr.bf16.mxu0 %v1951_v2  ;;  %v1921_v13 = vld [vmem:[%s2344_s2 + $0x1e8] sm:$0xff]  }
  0x29   : >> { %1693 = vmatprep.subr.bf16.mxu1 %v1951_v2 }
  0x2b   : >> { %1674 = vmatpush3.bf16.msra.mxu0 %v1872_v14  ;;  %v1922_v14 = vld [vmem:[%s2344_s2 + $0x1b0] sm:$0xff]  }
  0x2c   : >> { %1694 = vmatpush3.bf16.msra.mxu1 %v1873_v15  ;;  %1675 = vmatprep.subr.bf16.mxu0 %v1951_v2  ;;  %v1923_v15 = vld [vmem:[%s2344_s2 + $0x1f0] sm:$0xff]  }
  0x2d   : >> { %1695 = vmatprep.subr.bf16.mxu1 %v1951_v2 }
  0x2f   : >> { %1676 = vmatpush3.bf16.msra.mxu0 %v1874_v16  ;;  %v1924_v16 = vld [vmem:[%s2344_s2 + $0x1b8] sm:$0xff]  }
  0x30   : >> { %1696 = vmatpush3.bf16.msra.mxu1 %v1875_v17  ;;  %1701 = vmatprep.subr.bf16.mxu0 %v1951_v2  ;;  %v1925_v17 = vld [vmem:[%s2344_s2 + $0x1f8] sm:$0xff]  }
  0x31   : >> { %1721 = vmatprep.subr.bf16.mxu1 %v1951_v2 }
  0x32   : >> { %1678 = vmatmul.mubr.bf16.vlgmr.msra.gmra.mrb[0].mxu0 %v248_v18  ;;  %v1491_v18 = vld [vmem:[%s2079_s17 + $0x8] sm:$0x3] }
  0x33   : >> { %1698 = vmatmul.mubr.bf16.vlgmr.msra.gmra.mrb[0].mxu1 %v229_v19  ;;  %1702 = vmatpush3.bf16.msra.mxu0 %v1876_v20  ;;  %v1926_v19 = vld [vmem:[%s2344_s2 + $0x200] sm:$0xff]   ;;  %v1518_v20 = vld [vmem:[%s2073_s13 + $0x8] sm:$0x3] }
  0x34   : >> { %1722 = vmatpush3.bf16.msra.mxu1 %v1877_v21  ;;  %1703 = vmatprep.subr.bf16.mxu0 %v1951_v2  ;;  %v1927_v21 = vld [vmem:[%s2344_s2 + $0x208] sm:$0xff]  }
  0x35   : >> { %1723 = vmatprep.subr.bf16.mxu1 %v1951_v2  ;;  %1717 = vmatprep.mubr.msk.bf16.mxu0 %vm1952_vm0, %v1951_v2 }
  0x36   : >> { %1737 = vmatprep.mubr.msk.bf16.mxu1 %vm1952_vm0, %v1951_v2 }
  0x37   : >> { %1704 = vmatpush3.bf16.msra.mxu0 %v1878_v22  ;;  %v1928_v22 = vld [vmem:[%s2344_s2 + $0x210] sm:$0xff]  }
  0x38   : >> { %1724 = vmatpush3.bf16.msra.mxu1 %v1879_v23  ;;  %1705 = vmatprep.subr.bf16.mxu0 %v1951_v2  ;;  %v1929_v23 = vld [vmem:[%s2344_s2 + $0x218] sm:$0xff]  }
  0x39   : >> { %1725 = vmatprep.subr.bf16.mxu1 %v1951_v2 }
  0x3b   : >> { %1706 = vmatpush3.bf16.msra.mxu0 %v1880_v24  ;;  %v1930_v24 = vld [vmem:[%s2344_s2 + $0x220] sm:$0xff]  }
  0x3c   : >> { %1726 = vmatpush3.bf16.msra.mxu1 %v1881_v25  ;;  %1707 = vmatprep.subr.bf16.mxu0 %v1951_v2  ;;  %v1934_v25 = vld [vmem:[%s2079_s17 + $0x8] ss:$0 sps:$4 sm:$0x77]  }
  0x3d   : >> { %1727 = vmatprep.subr.bf16.mxu1 %v1951_v2 }
  0x3f   : >> { %1708 = vmatpush3.bf16.msra.mxu0 %v1882_v26  ;;  %v1931_v26 = vld [vmem:[%s2344_s2 + $0x228] sm:$0xff]  }
  0x40   : >> { %1728 = vmatpush3.bf16.msra.mxu1 %v1883_v27  ;;  %1709 = vmatprep.subr.bf16.mxu0 %v1951_v2  ;;  %v1140_v27 = vshll.u32 %v1934_v25, 16 }
  0x41   : >> { %1729 = vmatprep.subr.bf16.mxu1 %v1951_v2 }
  0x42   : >> { %v1142_v30 = vrot.slane %v1140_v27, 1 }
  0x43   : >> { %1710 = vmatpush3.bf16.msra.mxu0 %v1884_v28  ;;  %v1932_v28 = vld [vmem:[%s2344_s2 + $0x230] sm:$0xff]  }
  0x44   : >> { %1730 = vmatpush3.bf16.msra.mxu1 %v1885_v29  ;;  %1711 = vmatprep.subr.bf16.mxu0 %v1951_v2  ;;  %v1138_v29 = vshrl.u32 %v1934_v25, 16 }
  0x45   : >> { %1731 = vmatprep.subr.bf16.mxu1 %v1951_v2 }
  0x47   : >> { %1712 = vmatpush3.bf16.msra.mxu0 %v1886_v31  ;;  %v1933_v31 = vld [vmem:[%s2344_s2 + $0x238] sm:$0xff]  }
  0x48   : >> { %1732 = vmatpush3.bf16.msra.mxu1 %v1887_v32  ;;  %1713 = vmatprep.subr.bf16.mxu0 %v1951_v2  ;;  %v1143_v32 = vor.u32 %v1142_v30, %v1138_v29 }
  0x49   : >> { %1733 = vmatprep.subr.bf16.mxu1 %v1951_v2 }
  0x4b   : >> { %1714 = vmatpush3.bf16.msra.mxu0 %v1888_v33 }
  0x4c   : >> { %1734 = vmatpush3.bf16.msra.mxu1 %v1889_v35  ;;  %1715 = vmatprep.subr.bf16.mxu0 %v1951_v2 }
  0x4d   : >> { %1735 = vmatprep.subr.bf16.mxu1 %v1951_v2 }
  0x4f   : >> { %1716 = vmatpush3.bf16.msra.mxu0 %v1890_v38 }
  0x50   : >> { %1736 = vmatpush3.bf16.msra.mxu1 %v1891_v39  ;;  %1741 = vmatprep.subr.bf16.mxu0 %v1951_v2 }
  0x51   : >> { %1761 = vmatprep.subr.bf16.mxu1 %v1951_v2 }
  0x52   : >> { %1718 = vmatmul.mubr.bf16.vlgmr.msra.gmra.mrb[4].mxu0 %v469_v40 }
  0x53   : >> { %1742 = vmatpush3.bf16.msra.mxu0 %v1893_v41  ;;  %1738 = vmatmul.mubr.bf16.vlgmr.msra.gmra.mrb[4].mxu1 %v1411_v42 }
  0x54   : >> { %1762 = vmatpush3.bf16.msra.mxu1 %v1894_v43  ;;  %1743 = vmatprep.subr.bf16.mxu0 %v1951_v2 }
  0x55   : >> { %1763 = vmatprep.subr.bf16.mxu1 %v1951_v2  ;;  %1757 = vmatprep.mubr.msk.bf16.mxu0 %vm1952_vm0, %v1951_v2 }
  0x56   : >> { %1777 = vmatprep.mubr.msk.bf16.mxu1 %vm1952_vm0, %v1951_v2 }
  0x57   : >> { %1744 = vmatpush3.bf16.msra.mxu0 %v1895_v44 }
  0x58   : >> { %1764 = vmatpush3.bf16.msra.mxu1 %v1896_v45  ;;  %1745 = vmatprep.subr.bf16.mxu0 %v1951_v2 }
  0x59   : >> { %1765 = vmatprep.subr.bf16.mxu1 %v1951_v2 }
  0x5b   : >> { %1746 = vmatpush3.bf16.msra.mxu0 %v1897_v46 }
  0x5c   : >> { %1766 = vmatpush3.bf16.msra.mxu1 %v1898_v47  ;;  %1747 = vmatprep.subr.bf16.mxu0 %v1951_v2 }
  0x5d   : >> { %1767 = vmatprep.subr.bf16.mxu1 %v1951_v2 }
  0x5f   : >> { %1748 = vmatpush3.bf16.msra.mxu0 %v1899_v48 }
  0x60   : >> { %1768 = vmatpush3.bf16.msra.mxu1 %v1900_v49  ;;  %1749 = vmatprep.subr.bf16.mxu0 %v1951_v2 }
  0x61   : >> { %1769 = vmatprep.subr.bf16.mxu1 %v1951_v2 }
  0x63   : >> { %1750 = vmatpush3.bf16.msra.mxu0 %v1901_v50 }
  0x64   : >> { %1770 = vmatpush3.bf16.msra.mxu1 %v1902_v51  ;;  %1751 = vmatprep.subr.bf16.mxu0 %v1951_v2 }
  0x65   : >> { %1771 = vmatprep.subr.bf16.mxu1 %v1951_v2 }
  0x67   : >> { %1752 = vmatpush3.bf16.msra.mxu0 %v1903_v52 }
  0x68   : >> { %1772 = vmatpush3.bf16.msra.mxu1 %v1904_v54  ;;  %1753 = vmatprep.subr.bf16.mxu0 %v1951_v2 }
  0x69   : >> { %1773 = vmatprep.subr.bf16.mxu1 %v1951_v2 }
  0x6b   : >> { %1754 = vmatpush3.bf16.msra.mxu0 %v1905_v55 }
  0x6c   : >> { %1774 = vmatpush3.bf16.msra.mxu1 %v1906_v57  ;;  %1755 = vmatprep.subr.bf16.mxu0 %v1951_v2 }
  0x6d   : >> { %1775 = vmatprep.subr.bf16.mxu1 %v1951_v2 }
  0x6f   : >> { %1756 = vmatpush3.bf16.msra.mxu0 %v1907_v58 }
  0x70   : >> { %1776 = vmatpush3.bf16.msra.mxu1 %v1908_v61  ;;  %1781 = vmatprep.subr.bf16.mxu0 %v1951_v2 }
  0x71   : >> { %1801 = vmatprep.subr.bf16.mxu1 %v1951_v2 }
  0x72   : >> { %1758 = vmatmul.mubr.bf16.vlgmr.msra.gmra.mrb[8].mxu0 %v1438_v62 }
  0x73   : >> { %1782 = vmatpush3.bf16.msra.mxu0 %v1909_v63  ;;  %1778 = vmatmul.mubr.bf16.vlgmr.msra.gmra.mrb[8].mxu1 %v806_v1 }
  0x74   : >> { %1802 = vmatpush3.bf16.msra.mxu1 %v1911_v3  ;;  %1783 = vmatprep.subr.bf16.mxu0 %v1951_v2 }
  0x75   : >> { %1803 = vmatprep.subr.bf16.mxu1 %v1951_v2  ;;  %1797 = vmatprep.mubr.msk.bf16.mxu0 %vm1952_vm0, %v1951_v2 }
  0x76   : >> { %1817 = vmatprep.mubr.msk.bf16.mxu1 %vm1952_vm0, %v1951_v2 }
  0x77   : >> { %1784 = vmatpush3.bf16.msra.mxu0 %v1912_v4 }
  0x78   : >> { %1804 = vmatpush3.bf16.msra.mxu1 %v1913_v5  ;;  %1785 = vmatprep.subr.bf16.mxu0 %v1951_v2 }
  0x79   : >> { %1805 = vmatprep.subr.bf16.mxu1 %v1951_v2 }
  0x7b   : >> { %1786 = vmatpush3.bf16.msra.mxu0 %v1914_v6 }
  0x7c   : >> { %1806 = vmatpush3.bf16.msra.mxu1 %v1915_v7  ;;  %1787 = vmatprep.subr.bf16.mxu0 %v1951_v2 }
  0x7d   : >> { %1807 = vmatprep.subr.bf16.mxu1 %v1951_v2 }
  0x7f   : >> { %1788 = vmatpush3.bf16.msra.mxu0 %v1916_v8 }
  0x80   : >> { %1808 = vmatpush3.bf16.msra.mxu1 %v1917_v9  ;;  %1789 = vmatprep.subr.bf16.mxu0 %v1951_v2 }
  0x81   : >> { %1809 = vmatprep.subr.bf16.mxu1 %v1951_v2 }
  0x83   : >> { %1790 = vmatpush3.bf16.msra.mxu0 %v1918_v10 }
  0x84   : >> { %1810 = vmatpush3.bf16.msra.mxu1 %v1919_v11  ;;  %1791 = vmatprep.subr.bf16.mxu0 %v1951_v2 }
  0x85   : >> { %1811 = vmatprep.subr.bf16.mxu1 %v1951_v2 }
  0x87   : >> { %1792 = vmatpush3.bf16.msra.mxu0 %v1920_v12 }
  0x88   : >> { %1812 = vmatpush3.bf16.msra.mxu1 %v1921_v13  ;;  %1793 = vmatprep.subr.bf16.mxu0 %v1951_v2 }
  0x89   : >> { %1813 = vmatprep.subr.bf16.mxu1 %v1951_v2 }
  0x8b   : >> { %1794 = vmatpush3.bf16.msra.mxu0 %v1922_v14 }
  0x8c   : >> { %1814 = vmatpush3.bf16.msra.mxu1 %v1923_v15  ;;  %1795 = vmatprep.subr.bf16.mxu0 %v1951_v2 }
  0x8d   : >> { %1815 = vmatprep.subr.bf16.mxu1 %v1951_v2 }
  0x8f   : >> { %1796 = vmatpush3.bf16.msra.mxu0 %v1924_v16 }
  0x90   : >> { %1816 = vmatpush3.bf16.msra.mxu1 %v1925_v17  ;;  %1821 = vmatprep.subr.bf16.mxu0 %v1951_v2 }
  0x92   : >> { %1798 = vmatmul.mubr.bf16.vlgmr.msra.gmra.mrb[12].mxu0 %v1491_v18 }
  0x93   : >> { %1822 = vmatpush3.bf16.msra.mxu0 %v1926_v19  ;;  %1818 = vmatmul.mubr.bf16.vlgmr.msra.gmra.mrb[12].mxu1 %v1518_v20 }
  0x94   : >> { %1823 = vmatprep.subr.bf16.mxu0 %v1951_v2  ;;  %1837 = vmatprep.mubr.msk.bf16.mxu0 %vm1952_vm0, %v1951_v2 }
  0x97   : >> { %1824 = vmatpush3.bf16.msra.mxu0 %v1927_v21 }
  0x98   : >> { %1825 = vmatprep.subr.bf16.mxu0 %v1951_v2 }
  0x9b   : >> { %1826 = vmatpush3.bf16.msra.mxu0 %v1928_v22 }
  0x9c   : >> { %1827 = vmatprep.subr.bf16.mxu0 %v1951_v2 }
  0x9f   : >> { %1828 = vmatpush3.bf16.msra.mxu0 %v1929_v23 }
  0xa0   : >> { %1829 = vmatprep.subr.bf16.mxu0 %v1951_v2 }
  0xa3   : >> { %1830 = vmatpush3.bf16.msra.mxu0 %v1930_v24 }
  0xa4   : >> { %1831 = vmatprep.subr.bf16.mxu0 %v1951_v2 }
  0xa7   : >> { %1832 = vmatpush3.bf16.msra.mxu0 %v1931_v26 }
  0xa8   : >> { %1833 = vmatprep.subr.bf16.mxu0 %v1951_v2 }
  0xab   : >> { %1834 = vmatpush3.bf16.msra.mxu0 %v1932_v28 }
  0xac   : >> { %1835 = vmatprep.subr.bf16.mxu0 %v1951_v2 }
  0xaf   : >> { %1836 = vmatpush3.bf16.msra.mxu0 %v1933_v31 }
  0xb2   : >> { %1838 = vmatmul.mubr.bf16.vlgmr.msra.gmra.mrb[16].mxu0 %v1143_v32 }
 0x105   : >> { %v348_v33 = vpop.f32.mrb[0].mxu0 }
 0x106   : >> { %v1679_v34 = vpop.f32.mrb[1].mxu0  ;;  %v436_v35 = vpop.f32.mrb[0].mxu1 }
 0x107   : >> { %v437_v36 = vadd.f32 %v436_v35, %v348_v33  ;;  %v351_v37 = vpop.f32.mrb[2].mxu0  ;;  %v1699_v38 = vpop.f32.mrb[1].mxu1 }
 0x108   : >> { %v1680_v39 = vpop.f32.mrb[3].mxu0  ;;  %v439_v40 = vpop.f32.mrb[2].mxu1 }
 0x109   : >> { %v1700_v41 = vpop.f32.mrb[3].mxu1 }
 0x125   : >> { %v553_v42 = vpop.f32.mrb[4].mxu0 }
 0x126   : >> { %v559_v43 = vadd.f32 %v553_v42, %v437_v36  ;;  %v1719_v44 = vpop.f32.mrb[5].mxu0  ;;  %v663_v45 = vpop.f32.mrb[4].mxu1 }
 0x127   : >> { %v556_v46 = vpop.f32.mrb[6].mxu0  ;;  %v1739_v47 = vpop.f32.mrb[5].mxu1 }
 0x128   : >> { %v669_v48 = vadd.f32 %v663_v45, %v559_v43  ;;  %v1720_v2 = vpop.f32.mrb[7].mxu0  ;;  %v666_v49 = vpop.f32.mrb[6].mxu1 }
 0x129   : >> { %v1740_v50 = vpop.f32.mrb[7].mxu1 }
 0x145   : >> { %v772_v51 = vpop.f32.mrb[8].mxu0 }
 0x146   : >> { %v778_v52 = vadd.f32 %v772_v51, %v669_v48  ;;  %v1759_v53 = vpop.f32.mrb[9].mxu0  ;;  %v890_v54 = vpop.f32.mrb[8].mxu1 }
 0x147   : >> { %v775_v55 = vpop.f32.mrb[10].mxu0  ;;  %v1779_v56 = vpop.f32.mrb[9].mxu1 }
 0x148   : >> { %v896_v57 = vadd.f32 %v890_v54, %v778_v52  ;;  %v1760_v58 = vpop.f32.mrb[11].mxu0  ;;  %v893_v59 = vpop.f32.mrb[10].mxu1 }
 0x149   : >> { %v1780_v60 = vpop.f32.mrb[11].mxu1 }
 0x165   : >> { %v1000_v61 = vpop.f32.mrb[12].mxu0 }
 0x166   : >> { %v1006_v62 = vadd.f32 %v1000_v61, %v896_v57  ;;  %v1799_v63 = vpop.f32.mrb[13].mxu0  ;;  %v1109_v1 = vpop.f32.mrb[12].mxu1 }
 0x167   : >> { %v1003_v3 = vpop.f32.mrb[14].mxu0  ;;  %v1819_v4 = vpop.f32.mrb[13].mxu1 }
 0x168   : >> { %v1115_v5 = vadd.f32 %v1109_v1, %v1006_v62  ;;  %v1800_v6 = vpop.f32.mrb[15].mxu0  ;;  %v1112_v7 = vpop.f32.mrb[14].mxu1 }
 0x169   : >> { %v1820_v8 = vpop.f32.mrb[15].mxu1 }
 0x185   : >> { %v1227_v9 = vpop.f32.mrb[16].mxu0 }
 0x186   : >> { %v1233_v10 = vadd.f32 %v1227_v9, %v1115_v5  ;;  %v1839_v11 = vpop.f32.mrb[17].mxu0 }
 0x187   : >> { %v1230_v12 = vpop.f32.mrb[18].mxu0 }
 0x188   : >> { %v1240_v13 = vadd.f32 %v1989_v0, %v1233_v10  ;;  %v1840_v14 = vpop.f32.mrb[19].mxu0  ;;  %224 = sbr.rel (!%p222_p4) target bundleno = 17 (0x11), region = 91 }
 0x18a   : >> { %v1241_v15 = vmax.f32 %v1240_v13, 0.0 }
 0x18c   : >> { %v1242_v16 = vpack.c.bf16 %v1241_v15, %v1241_v15 }
 0x18e   : >> { %1245 = vst [vmem:[%s1244_s16] sm:$0x3] %v1242_v16 }
 0x18f PF: > { %s14_s15 = sadd.s32 1, %s1945_s15  }
 0x190   : > { %p11_p5 = scmp.ge.s32.totalorder %s14_s15, 4  }
 0x192   :  { %13 = sbr.rel (!%p11_p5) target bundleno = 1 (0x1), region = 102 }

// kernel: flexible_image_encoder.6
= control target key start
LH: loop header
LB: loop body
LE: loop exit
PB: predicated region body
PF: predicated region fallthrough
CT: control target
= control target key end

     0   :  { %s1981_s15 = smov 0   ;;  %s2345_s0 = inlined_call_operand.vmem [shape: bf16[2,6,3,128], index: 0, kind: input, shape index: {}]   ;;  %s2346_s1 = inlined_call_operand.vmem [shape: bf16[2,6,3,128], index: 1, kind: input, shape index: {}]   ;;  %s2347_s2 = inlined_call_operand.vmem [shape: bf16[9,128,128], index: 2, kind: input, shape index: {}]   ;;  %s2348_s3 = inlined_call_operand.vmem [shape: f32[1,128], index: 3, kind: input, shape index: {}]   ;;  %s2349_s4 = inlined_call_operand.vmem [shape: bf16[2,2,2,128], index: 4, kind: output, shape index: {}]  }
   0x1 LB: > { %s1349_s16 = sadd.s32 4294967295, %s1948_s15   ;;  %p1353_p0 = scmp.ge.s32.totalorder %s1948_s15, 1  ;;  %s1948_s15 = sphi %s1981_s15, %s14_s15  }
   0x2   : > { %p172_p1 = scmp.lt.s32.totalorder %s1948_s15, 3 }
   0x4   : > { %p173_p2 = pnand %p1353_p0, %p172_p1 }
   0x5   : > { %p202_p3 = scmp.lt.s32.totalorder (!%p173_p2), %s1349_s16, 1  ;;  %v1992_v0 = vld [vmem:[%s2348_s3] ss:$0 sm:$0xff] (!%p173_p2)  ;;  %s2009_s30 = smov (!%p173_p2), 0  }
   0x6   : > { %176 = sbr.rel (%p173_p2) target bundleno = 399 (0x18f), region = 36 }
   0xd   : > { %s2351_s16 = smov (!%p202_p3, %s1349_s16), 1 }
   0xe   : > { %s1847_s19 = smul.u32 12, %s2351_s16  ;;  %s1356_s20 = sshll.u32 %s2351_s16, 1 }
   0xf   : > { %s1997_s23 = scalar_lea.vmem %s2349_s4, %s1356_s20 }
  0x10   : > { %s2002_s26 = scalar_lea.vmem %s2345_s0, %s1847_s19  ;;  %s2007_s29 = scalar_lea.vmem %s2346_s1, %s1847_s19 }
  0x11 LB: >> { %v1866_v1 = vld [vmem:[%s2347_s2 + $0x40] sm:$0xff]   ;;  %v1954_v2 = vmov 0.0   ;;  %v1868_v4 = vld [vmem:[%s2347_s2 + $0x48] sm:$0xff]   ;;  %vm1955_vm0 = vmmov 0   ;;  %v1870_v6 = vld [vmem:[%s2347_s2 + $0x50] sm:$0xff]   ;;  %s1580_s10 = sshll.u32 %s1952_s30, 2  ;;  %s1952_s30 = sphi %s2009_s30, %s223_s30  }
  0x12   : >> { %1667 = vmatprep.subr.bf16.mxu0 %v1954_v2  ;;  %1687 = vmatprep.subr.bf16.mxu1 %v1954_v2  ;;  %v1867_v3 = vld [vmem:[%s2347_s2] sm:$0xff]   ;;  %v1869_v5 = vld [vmem:[%s2347_s2 + $0x8] sm:$0xff]   ;;  %v1871_v7 = vld [vmem:[%s2347_s2 + $0x10] sm:$0xff]   ;;  %s2076_s13 = scalar_lea.vmem %s2007_s29, %s1580_s10  ;;  %s2082_s17 = scalar_lea.vmem %s2002_s26, %s1580_s10 }
  0x13   : >> { %1668 = vmatpush3.bf16.msra.mxu0 %v1866_v1  ;;  %1683 = vmatprep.mubr.msk.bf16.mxu0 %vm1955_vm0, %v1954_v2  ;;  %v1872_v8 = vld [vmem:[%s2347_s2 + $0x58] sm:$0xff]   ;;  %v1874_v10 = vld [vmem:[%s2347_s2 + $0x60] sm:$0xff]   ;;  %v1876_v12 = vld [vmem:[%s2347_s2 + $0x68] sm:$0xff]  }
  0x14   : >> { %1688 = vmatpush3.bf16.msra.mxu1 %v1867_v3  ;;  %1669 = vmatprep.subr.bf16.mxu0 %v1954_v2  ;;  %v1873_v9 = vld [vmem:[%s2347_s2 + $0x18] sm:$0xff]   ;;  %v1875_v11 = vld [vmem:[%s2347_s2 + $0x20] sm:$0xff]   ;;  %v1877_v13 = vld [vmem:[%s2347_s2 + $0x28] sm:$0xff]  }
  0x15   : >> { %1689 = vmatprep.subr.bf16.mxu1 %v1954_v2  ;;  %1703 = vmatprep.mubr.msk.bf16.mxu1 %vm1955_vm0, %v1954_v2  ;;  %v1878_v14 = vld [vmem:[%s2347_s2 + $0x70] sm:$0xff]   ;;  %v1880_v16 = vld [vmem:[%s2347_s2 + $0x78] sm:$0xff]   ;;  %v246_v18 = vld [vmem:[%s2076_s13] sm:$0x1] }
  0x16   : >> { %v1879_v15 = vld [vmem:[%s2347_s2 + $0x30] sm:$0xff]   ;;  %v1881_v17 = vld [vmem:[%s2347_s2 + $0x38] sm:$0xff]   ;;  %v227_v19 = vld [vmem:[%s2082_s17] sm:$0x1] }
  0x17   : >> { %1670 = vmatpush3.bf16.msra.mxu0 %v1868_v4  ;;  %v1882_v20 = vld [vmem:[%s2347_s2 + $0x80] sm:$0xff]   ;;  %v1884_v22 = vld [vmem:[%s2347_s2 + $0x88] sm:$0xff]   ;;  %v1886_v24 = vld [vmem:[%s2347_s2 + $0x90] sm:$0xff]  }
  0x18   : >> { %1690 = vmatpush3.bf16.msra.mxu1 %v1869_v5  ;;  %1671 = vmatprep.subr.bf16.mxu0 %v1954_v2  ;;  %v1883_v21 = vld [vmem:[%s2347_s2 + $0xc0] sm:$0xff]   ;;  %v1885_v23 = vld [vmem:[%s2347_s2 + $0xc8] sm:$0xff]   ;;  %v1887_v25 = vld [vmem:[%s2347_s2 + $0xd0] sm:$0xff]  }
  0x19   : >> { %1691 = vmatprep.subr.bf16.mxu1 %v1954_v2  ;;  %v1888_v26 = vld [vmem:[%s2347_s2 + $0x98] sm:$0xff]   ;;  %v1890_v28 = vld [vmem:[%s2347_s2 + $0xa0] sm:$0xff]   ;;  %v1892_v31 = vld [vmem:[%s2347_s2 + $0xa8] sm:$0xff]  }
  0x1a   : >> { %v1889_v27 = vld [vmem:[%s2347_s2 + $0xd8] sm:$0xff]   ;;  %v1891_v29 = vld [vmem:[%s2347_s2 + $0xe0] sm:$0xff]   ;;  %v1893_v32 = vld [vmem:[%s2347_s2 + $0xe8] sm:$0xff]  }
  0x1b   : >> { %1672 = vmatpush3.bf16.msra.mxu0 %v1870_v6  ;;  %v1408_v30 = vld.sshfl [vmem:[%s2082_s17] sm:$0x3 pattern:$0x76325410]  ;;  %v1894_v34 = vld [vmem:[%s2347_s2 + $0xb0] sm:$0xff]   ;;  %v1896_v38 = vld [vmem:[%s2347_s2 + $0xb8] sm:$0xff]  }
  0x1c   : >> { %1692 = vmatpush3.bf16.msra.mxu1 %v1871_v7  ;;  %1673 = vmatprep.subr.bf16.mxu0 %v1954_v2  ;;  %v469_v33 = vshll.u32 %v1408_v30, 16  ;;  %v1895_v35 = vld [vmem:[%s2347_s2 + $0xf0] sm:$0xff]   ;;  %v467_v36 = vshrl.u32 %v1408_v30, 16  ;;  %v1897_v39 = vld [vmem:[%s2347_s2 + $0xf8] sm:$0xff]   ;;  %v1898_v41 = vld [vmem:[%s2347_s2 + $0x100] sm:$0xff]  }
  0x1d   : >> { %1693 = vmatprep.subr.bf16.mxu1 %v1954_v2  ;;  %v1419_v42 = vld [vmem:[%s2082_s17 + $0x2] sm:$0x1]  ;;  %v1900_v44 = vld [vmem:[%s2347_s2 + $0x108] sm:$0xff]   ;;  %v1902_v46 = vld [vmem:[%s2347_s2 + $0x110] sm:$0xff]  }
  0x1e   : >> { %v471_v37 = vrot.slane %v469_v33, 1  ;;  %v1899_v43 = vld [vmem:[%s2347_s2 + $0x140] sm:$0xff]   ;;  %v1901_v45 = vld [vmem:[%s2347_s2 + $0x148] sm:$0xff]   ;;  %v1903_v47 = vld [vmem:[%s2347_s2 + $0x150] sm:$0xff]  }
  0x1f   : >> { %1674 = vmatpush3.bf16.msra.mxu0 %v1872_v8  ;;  %v1904_v48 = vld [vmem:[%s2347_s2 + $0x118] sm:$0xff]   ;;  %v1906_v50 = vld [vmem:[%s2347_s2 + $0x120] sm:$0xff]   ;;  %v1908_v52 = vld [vmem:[%s2347_s2 + $0x128] sm:$0xff]  }
  0x20   : >> { %1694 = vmatpush3.bf16.msra.mxu1 %v1873_v9  ;;  %1675 = vmatprep.subr.bf16.mxu0 %v1954_v2  ;;  %v472_v40 = vor.u32 %v471_v37, %v467_v36  ;;  %v1905_v49 = vld [vmem:[%s2347_s2 + $0x158] sm:$0xff]   ;;  %v1907_v51 = vld [vmem:[%s2347_s2 + $0x160] sm:$0xff]   ;;  %v1909_v53 = vld [vmem:[%s2347_s2 + $0x168] sm:$0xff]  }
  0x21   : >> { %1695 = vmatprep.subr.bf16.mxu1 %v1954_v2  ;;  %v1488_v54 = vld.sshfl [vmem:[%s2082_s17 + $0x2] sm:$0x3 pattern:$0x76325410]  ;;  %v1910_v55 = vld [vmem:[%s2347_s2 + $0x130] sm:$0xff]   ;;  %v1912_v58 = vld [vmem:[%s2347_s2 + $0x138] sm:$0xff]  }
  0x22   : >> { %v811_v56 = vshll.u32 %v1488_v54, 16  ;;  %v1911_v57 = vld [vmem:[%s2347_s2 + $0x170] sm:$0xff]   ;;  %v809_v59 = vshrl.u32 %v1488_v54, 16  ;;  %v1913_v61 = vld [vmem:[%s2347_s2 + $0x178] sm:$0xff]   ;;  %v1446_v62 = vld [vmem:[%s2076_s13 + $0x2] sm:$0x1] }
  0x23   : >> { %1676 = vmatpush3.bf16.msra.mxu0 %v1874_v10  ;;  %v1914_v63 = vld [vmem:[%s2347_s2 + $0x180] sm:$0xff]   ;;  %v1916_v4 = vld [vmem:[%s2347_s2 + $0x188] sm:$0xff]   ;;  %v1918_v6 = vld [vmem:[%s2347_s2 + $0x190] sm:$0xff]  }
  0x24   : >> { %1696 = vmatpush3.bf16.msra.mxu1 %v1875_v11  ;;  %1677 = vmatprep.subr.bf16.mxu0 %v1954_v2  ;;  %v813_v60 = vrot.slane %v811_v56, 1  ;;  %v1915_v3 = vld [vmem:[%s2347_s2 + $0x1c0] sm:$0xff]   ;;  %v1917_v5 = vld [vmem:[%s2347_s2 + $0x1c8] sm:$0xff]   ;;  %v1919_v7 = vld [vmem:[%s2347_s2 + $0x1d0] sm:$0xff]  }
  0x25   : >> { %1697 = vmatprep.subr.bf16.mxu1 %v1954_v2  ;;  %v1920_v8 = vld [vmem:[%s2347_s2 + $0x198] sm:$0xff]   ;;  %v1922_v10 = vld [vmem:[%s2347_s2 + $0x1a0] sm:$0xff]  }
  0x26   : >> { %v814_v1 = vor.u32 %v813_v60, %v809_v59  ;;  %v1921_v9 = vld [vmem:[%s2347_s2 + $0x1d8] sm:$0xff]   ;;  %v1923_v11 = vld [vmem:[%s2347_s2 + $0x1e0] sm:$0xff]  }
  0x27   : >> { %1678 = vmatpush3.bf16.msra.mxu0 %v1876_v12  ;;  %v1924_v12 = vld [vmem:[%s2347_s2 + $0x1a8] sm:$0xff]  }
  0x28   : >> { %1698 = vmatpush3.bf16.msra.mxu1 %v1877_v13  ;;  %1679 = vmatprep.subr.bf16.mxu0 %v1954_v2  ;;  %v1925_v13 = vld [vmem:[%s2347_s2 + $0x1e8] sm:$0xff]  }
  0x29   : >> { %1699 = vmatprep.subr.bf16.mxu1 %v1954_v2 }
  0x2b   : >> { %1680 = vmatpush3.bf16.msra.mxu0 %v1878_v14  ;;  %v1926_v14 = vld [vmem:[%s2347_s2 + $0x1b0] sm:$0xff]  }
  0x2c   : >> { %1700 = vmatpush3.bf16.msra.mxu1 %v1879_v15  ;;  %1681 = vmatprep.subr.bf16.mxu0 %v1954_v2  ;;  %v1927_v15 = vld [vmem:[%s2347_s2 + $0x1f0] sm:$0xff]  }
  0x2d   : >> { %1701 = vmatprep.subr.bf16.mxu1 %v1954_v2 }
  0x2f   : >> { %1682 = vmatpush3.bf16.msra.mxu0 %v1880_v16  ;;  %v1928_v16 = vld [vmem:[%s2347_s2 + $0x1b8] sm:$0xff]  }
  0x30   : >> { %1702 = vmatpush3.bf16.msra.mxu1 %v1881_v17  ;;  %1707 = vmatprep.subr.bf16.mxu0 %v1954_v2  ;;  %v1929_v17 = vld [vmem:[%s2347_s2 + $0x1f8] sm:$0xff]  }
  0x31   : >> { %1727 = vmatprep.subr.bf16.mxu1 %v1954_v2 }
  0x32   : >> { %1684 = vmatmul.mubr.bf16.vlgmr.msra.gmra.mrb[0].mxu0 %v246_v18  ;;  %v1499_v18 = vld [vmem:[%s2082_s17 + $0x4] sm:$0x1] }
  0x33   : >> { %1704 = vmatmul.mubr.bf16.vlgmr.msra.gmra.mrb[0].mxu1 %v227_v19  ;;  %1708 = vmatpush3.bf16.msra.mxu0 %v1882_v20  ;;  %v1930_v19 = vld [vmem:[%s2347_s2 + $0x200] sm:$0xff]  }
  0x34   : >> { %1728 = vmatpush3.bf16.msra.mxu1 %v1883_v21  ;;  %1709 = vmatprep.subr.bf16.mxu0 %v1954_v2  ;;  %v1526_v20 = vld [vmem:[%s2076_s13 + $0x4] sm:$0x1]  ;;  %v1931_v21 = vld [vmem:[%s2347_s2 + $0x208] sm:$0xff]  }
  0x35   : >> { %1729 = vmatprep.subr.bf16.mxu1 %v1954_v2  ;;  %1723 = vmatprep.mubr.msk.bf16.mxu0 %vm1955_vm0, %v1954_v2 }
  0x36   : >> { %1743 = vmatprep.mubr.msk.bf16.mxu1 %vm1955_vm0, %v1954_v2 }
  0x37   : >> { %1710 = vmatpush3.bf16.msra.mxu0 %v1884_v22  ;;  %v1932_v22 = vld [vmem:[%s2347_s2 + $0x210] sm:$0xff]  }
  0x38   : >> { %1730 = vmatpush3.bf16.msra.mxu1 %v1885_v23  ;;  %1711 = vmatprep.subr.bf16.mxu0 %v1954_v2  ;;  %v1933_v23 = vld [vmem:[%s2347_s2 + $0x218] sm:$0xff]  }
  0x39   : >> { %1731 = vmatprep.subr.bf16.mxu1 %v1954_v2 }
  0x3b   : >> { %1712 = vmatpush3.bf16.msra.mxu0 %v1886_v24  ;;  %v1934_v24 = vld [vmem:[%s2347_s2 + $0x220] sm:$0xff]  }
  0x3c   : >> { %1732 = vmatpush3.bf16.msra.mxu1 %v1887_v25  ;;  %1713 = vmatprep.subr.bf16.mxu0 %v1954_v2  ;;  %v1935_v25 = vld [vmem:[%s2347_s2 + $0x228] sm:$0xff]  }
  0x3d   : >> { %1733 = vmatprep.subr.bf16.mxu1 %v1954_v2 }
  0x3f   : >> { %1714 = vmatpush3.bf16.msra.mxu0 %v1888_v26  ;;  %v1568_v26 = vld.sshfl [vmem:[%s2082_s17 + $0x4] sm:$0x3 pattern:$0x76325410]  ;;  %s1256_s17 = scalar_lea.vmem %s1997_s23, %s1952_s30  ;;  %s223_s30 = sadd.s32 1, %s1952_s30  }
  0x40   : >> { %1734 = vmatpush3.bf16.msra.mxu1 %v1889_v27  ;;  %1715 = vmatprep.subr.bf16.mxu0 %v1954_v2  ;;  %v1153_v27 = vshll.u32 %v1568_v26, 16  ;;  %p220_p4 = scmp.ge.s32.totalorder %s223_s30, 2  }
  0x41   : >> { %1735 = vmatprep.subr.bf16.mxu1 %v1954_v2 }
  0x42   : >> { %v1155_v30 = vrot.slane %v1153_v27, 1 }
  0x43   : >> { %1716 = vmatpush3.bf16.msra.mxu0 %v1890_v28  ;;  %v1936_v28 = vld [vmem:[%s2347_s2 + $0x230] sm:$0xff]  }
  0x44   : >> { %1736 = vmatpush3.bf16.msra.mxu1 %v1891_v29  ;;  %1717 = vmatprep.subr.bf16.mxu0 %v1954_v2  ;;  %v1151_v29 = vshrl.u32 %v1568_v26, 16 }
  0x45   : >> { %1737 = vmatprep.subr.bf16.mxu1 %v1954_v2 }
  0x47   : >> { %1718 = vmatpush3.bf16.msra.mxu0 %v1892_v31  ;;  %v1937_v31 = vld [vmem:[%s2347_s2 + $0x238] sm:$0xff]  }
  0x48   : >> { %1738 = vmatpush3.bf16.msra.mxu1 %v1893_v32  ;;  %1719 = vmatprep.subr.bf16.mxu0 %v1954_v2  ;;  %v1156_v32 = vor.u32 %v1155_v30, %v1151_v29 }
  0x49   : >> { %1739 = vmatprep.subr.bf16.mxu1 %v1954_v2 }
  0x4b   : >> { %1720 = vmatpush3.bf16.msra.mxu0 %v1894_v34 }
  0x4c   : >> { %1740 = vmatpush3.bf16.msra.mxu1 %v1895_v35  ;;  %1721 = vmatprep.subr.bf16.mxu0 %v1954_v2 }
  0x4d   : >> { %1741 = vmatprep.subr.bf16.mxu1 %v1954_v2 }
  0x4f   : >> { %1722 = vmatpush3.bf16.msra.mxu0 %v1896_v38 }
  0x50   : >> { %1742 = vmatpush3.bf16.msra.mxu1 %v1897_v39  ;;  %1747 = vmatprep.subr.bf16.mxu0 %v1954_v2 }
  0x51   : >> { %1767 = vmatprep.subr.bf16.mxu1 %v1954_v2 }
  0x52   : >> { %1724 = vmatmul.mubr.bf16.vlgmr.msra.gmra.mrb[4].mxu0 %v472_v40 }
  0x53   : >> { %1748 = vmatpush3.bf16.msra.mxu0 %v1898_v41  ;;  %1744 = vmatmul.mubr.bf16.vlgmr.msra.gmra.mrb[4].mxu1 %v1419_v42 }
  0x54   : >> { %1768 = vmatpush3.bf16.msra.mxu1 %v1899_v43  ;;  %1749 = vmatprep.subr.bf16.mxu0 %v1954_v2 }
  0x55   : >> { %1769 = vmatprep.subr.bf16.mxu1 %v1954_v2  ;;  %1763 = vmatprep.mubr.msk.bf16.mxu0 %vm1955_vm0, %v1954_v2 }
  0x56   : >> { %1783 = vmatprep.mubr.msk.bf16.mxu1 %vm1955_vm0, %v1954_v2 }
  0x57   : >> { %1750 = vmatpush3.bf16.msra.mxu0 %v1900_v44 }
  0x58   : >> { %1770 = vmatpush3.bf16.msra.mxu1 %v1901_v45  ;;  %1751 = vmatprep.subr.bf16.mxu0 %v1954_v2 }
  0x59   : >> { %1771 = vmatprep.subr.bf16.mxu1 %v1954_v2 }
  0x5b   : >> { %1752 = vmatpush3.bf16.msra.mxu0 %v1902_v46 }
  0x5c   : >> { %1772 = vmatpush3.bf16.msra.mxu1 %v1903_v47  ;;  %1753 = vmatprep.subr.bf16.mxu0 %v1954_v2 }
  0x5d   : >> { %1773 = vmatprep.subr.bf16.mxu1 %v1954_v2 }
  0x5f   : >> { %1754 = vmatpush3.bf16.msra.mxu0 %v1904_v48 }
  0x60   : >> { %1774 = vmatpush3.bf16.msra.mxu1 %v1905_v49  ;;  %1755 = vmatprep.subr.bf16.mxu0 %v1954_v2 }
  0x61   : >> { %1775 = vmatprep.subr.bf16.mxu1 %v1954_v2 }
  0x63   : >> { %1756 = vmatpush3.bf16.msra.mxu0 %v1906_v50 }
  0x64   : >> { %1776 = vmatpush3.bf16.msra.mxu1 %v1907_v51  ;;  %1757 = vmatprep.subr.bf16.mxu0 %v1954_v2 }
  0x65   : >> { %1777 = vmatprep.subr.bf16.mxu1 %v1954_v2 }
  0x67   : >> { %1758 = vmatpush3.bf16.msra.mxu0 %v1908_v52 }
  0x68   : >> { %1778 = vmatpush3.bf16.msra.mxu1 %v1909_v53  ;;  %1759 = vmatprep.subr.bf16.mxu0 %v1954_v2 }
  0x69   : >> { %1779 = vmatprep.subr.bf16.mxu1 %v1954_v2 }
  0x6b   : >> { %1760 = vmatpush3.bf16.msra.mxu0 %v1910_v55 }
  0x6c   : >> { %1780 = vmatpush3.bf16.msra.mxu1 %v1911_v57  ;;  %1761 = vmatprep.subr.bf16.mxu0 %v1954_v2 }
  0x6d   : >> { %1781 = vmatprep.subr.bf16.mxu1 %v1954_v2 }
  0x6f   : >> { %1762 = vmatpush3.bf16.msra.mxu0 %v1912_v58 }
  0x70   : >> { %1782 = vmatpush3.bf16.msra.mxu1 %v1913_v61  ;;  %1787 = vmatprep.subr.bf16.mxu0 %v1954_v2 }
  0x71   : >> { %1807 = vmatprep.subr.bf16.mxu1 %v1954_v2 }
  0x72   : >> { %1764 = vmatmul.mubr.bf16.vlgmr.msra.gmra.mrb[8].mxu0 %v1446_v62 }
  0x73   : >> { %1788 = vmatpush3.bf16.msra.mxu0 %v1914_v63  ;;  %1784 = vmatmul.mubr.bf16.vlgmr.msra.gmra.mrb[8].mxu1 %v814_v1 }
  0x74   : >> { %1808 = vmatpush3.bf16.msra.mxu1 %v1915_v3  ;;  %1789 = vmatprep.subr.bf16.mxu0 %v1954_v2 }
  0x75   : >> { %1809 = vmatprep.subr.bf16.mxu1 %v1954_v2  ;;  %1803 = vmatprep.mubr.msk.bf16.mxu0 %vm1955_vm0, %v1954_v2 }
  0x76   : >> { %1823 = vmatprep.mubr.msk.bf16.mxu1 %vm1955_vm0, %v1954_v2 }
  0x77   : >> { %1790 = vmatpush3.bf16.msra.mxu0 %v1916_v4 }
  0x78   : >> { %1810 = vmatpush3.bf16.msra.mxu1 %v1917_v5  ;;  %1791 = vmatprep.subr.bf16.mxu0 %v1954_v2 }
  0x79   : >> { %1811 = vmatprep.subr.bf16.mxu1 %v1954_v2 }
  0x7b   : >> { %1792 = vmatpush3.bf16.msra.mxu0 %v1918_v6 }
  0x7c   : >> { %1812 = vmatpush3.bf16.msra.mxu1 %v1919_v7  ;;  %1793 = vmatprep.subr.bf16.mxu0 %v1954_v2 }
  0x7d   : >> { %1813 = vmatprep.subr.bf16.mxu1 %v1954_v2 }
  0x7f   : >> { %1794 = vmatpush3.bf16.msra.mxu0 %v1920_v8 }
  0x80   : >> { %1814 = vmatpush3.bf16.msra.mxu1 %v1921_v9  ;;  %1795 = vmatprep.subr.bf16.mxu0 %v1954_v2 }
  0x81   : >> { %1815 = vmatprep.subr.bf16.mxu1 %v1954_v2 }
  0x83   : >> { %1796 = vmatpush3.bf16.msra.mxu0 %v1922_v10 }
  0x84   : >> { %1816 = vmatpush3.bf16.msra.mxu1 %v1923_v11  ;;  %1797 = vmatprep.subr.bf16.mxu0 %v1954_v2 }
  0x85   : >> { %1817 = vmatprep.subr.bf16.mxu1 %v1954_v2 }
  0x87   : >> { %1798 = vmatpush3.bf16.msra.mxu0 %v1924_v12 }
  0x88   : >> { %1818 = vmatpush3.bf16.msra.mxu1 %v1925_v13  ;;  %1799 = vmatprep.subr.bf16.mxu0 %v1954_v2 }
  0x89   : >> { %1819 = vmatprep.subr.bf16.mxu1 %v1954_v2 }
  0x8b   : >> { %1800 = vmatpush3.bf16.msra.mxu0 %v1926_v14 }
  0x8c   : >> { %1820 = vmatpush3.bf16.msra.mxu1 %v1927_v15  ;;  %1801 = vmatprep.subr.bf16.mxu0 %v1954_v2 }
  0x8d   : >> { %1821 = vmatprep.subr.bf16.mxu1 %v1954_v2 }
  0x8f   : >> { %1802 = vmatpush3.bf16.msra.mxu0 %v1928_v16 }
  0x90   : >> { %1822 = vmatpush3.bf16.msra.mxu1 %v1929_v17  ;;  %1827 = vmatprep.subr.bf16.mxu0 %v1954_v2 }
  0x92   : >> { %1804 = vmatmul.mubr.bf16.vlgmr.msra.gmra.mrb[12].mxu0 %v1499_v18 }
  0x93   : >> { %1828 = vmatpush3.bf16.msra.mxu0 %v1930_v19  ;;  %1824 = vmatmul.mubr.bf16.vlgmr.msra.gmra.mrb[12].mxu1 %v1526_v20 }
  0x94   : >> { %1829 = vmatprep.subr.bf16.mxu0 %v1954_v2  ;;  %1843 = vmatprep.mubr.msk.bf16.mxu0 %vm1955_vm0, %v1954_v2 }
  0x97   : >> { %1830 = vmatpush3.bf16.msra.mxu0 %v1931_v21 }
  0x98   : >> { %1831 = vmatprep.subr.bf16.mxu0 %v1954_v2 }
  0x9b   : >> { %1832 = vmatpush3.bf16.msra.mxu0 %v1932_v22 }
  0x9c   : >> { %1833 = vmatprep.subr.bf16.mxu0 %v1954_v2 }
  0x9f   : >> { %1834 = vmatpush3.bf16.msra.mxu0 %v1933_v23 }
  0xa0   : >> { %1835 = vmatprep.subr.bf16.mxu0 %v1954_v2 }
  0xa3   : >> { %1836 = vmatpush3.bf16.msra.mxu0 %v1934_v24 }
  0xa4   : >> { %1837 = vmatprep.subr.bf16.mxu0 %v1954_v2 }
  0xa7   : >> { %1838 = vmatpush3.bf16.msra.mxu0 %v1935_v25 }
  0xa8   : >> { %1839 = vmatprep.subr.bf16.mxu0 %v1954_v2 }
  0xab   : >> { %1840 = vmatpush3.bf16.msra.mxu0 %v1936_v28 }
  0xac   : >> { %1841 = vmatprep.subr.bf16.mxu0 %v1954_v2 }
  0xaf   : >> { %1842 = vmatpush3.bf16.msra.mxu0 %v1937_v31 }
  0xb2   : >> { %1844 = vmatmul.mubr.bf16.vlgmr.msra.gmra.mrb[16].mxu0 %v1156_v32 }
 0x105   : >> { %v346_v33 = vpop.f32.mrb[0].mxu0 }
 0x106   : >> { %v1685_v34 = vpop.f32.mrb[1].mxu0  ;;  %v434_v35 = vpop.f32.mrb[0].mxu1 }
 0x107   : >> { %v435_v36 = vadd.f32 %v434_v35, %v346_v33  ;;  %v349_v37 = vpop.f32.mrb[2].mxu0  ;;  %v1705_v38 = vpop.f32.mrb[1].mxu1 }
 0x108   : >> { %v1686_v39 = vpop.f32.mrb[3].mxu0  ;;  %v437_v40 = vpop.f32.mrb[2].mxu1 }
 0x109   : >> { %v1706_v41 = vpop.f32.mrb[3].mxu1 }
 0x125   : >> { %v556_v42 = vpop.f32.mrb[4].mxu0 }
 0x126   : >> { %v562_v43 = vadd.f32 %v556_v42, %v435_v36  ;;  %v1725_v44 = vpop.f32.mrb[5].mxu0  ;;  %v666_v45 = vpop.f32.mrb[4].mxu1 }
 0x127   : >> { %v559_v46 = vpop.f32.mrb[6].mxu0  ;;  %v1745_v47 = vpop.f32.mrb[5].mxu1 }
 0x128   : >> { %v672_v48 = vadd.f32 %v666_v45, %v562_v43  ;;  %v1726_v2 = vpop.f32.mrb[7].mxu0  ;;  %v669_v49 = vpop.f32.mrb[6].mxu1 }
 0x129   : >> { %v1746_v50 = vpop.f32.mrb[7].mxu1 }
 0x145   : >> { %v775_v51 = vpop.f32.mrb[8].mxu0 }
 0x146   : >> { %v781_v52 = vadd.f32 %v775_v51, %v672_v48  ;;  %v1765_v53 = vpop.f32.mrb[9].mxu0  ;;  %v898_v54 = vpop.f32.mrb[8].mxu1 }
 0x147   : >> { %v778_v55 = vpop.f32.mrb[10].mxu0  ;;  %v1785_v56 = vpop.f32.mrb[9].mxu1 }
 0x148   : >> { %v904_v57 = vadd.f32 %v898_v54, %v781_v52  ;;  %v1766_v58 = vpop.f32.mrb[11].mxu0  ;;  %v901_v59 = vpop.f32.mrb[10].mxu1 }
 0x149   : >> { %v1786_v60 = vpop.f32.mrb[11].mxu1 }
 0x165   : >> { %v1008_v61 = vpop.f32.mrb[12].mxu0 }
 0x166   : >> { %v1014_v62 = vadd.f32 %v1008_v61, %v904_v57  ;;  %v1805_v63 = vpop.f32.mrb[13].mxu0  ;;  %v1117_v1 = vpop.f32.mrb[12].mxu1 }
 0x167   : >> { %v1011_v3 = vpop.f32.mrb[14].mxu0  ;;  %v1825_v4 = vpop.f32.mrb[13].mxu1 }
 0x168   : >> { %v1123_v5 = vadd.f32 %v1117_v1, %v1014_v62  ;;  %v1806_v6 = vpop.f32.mrb[15].mxu0  ;;  %v1120_v7 = vpop.f32.mrb[14].mxu1 }
 0x169   : >> { %v1826_v8 = vpop.f32.mrb[15].mxu1 }
 0x185   : >> { %v1240_v9 = vpop.f32.mrb[16].mxu0 }
 0x186   : >> { %v1246_v10 = vadd.f32 %v1240_v9, %v1123_v5  ;;  %v1845_v11 = vpop.f32.mrb[17].mxu0 }
 0x187   : >> { %v1243_v12 = vpop.f32.mrb[18].mxu0 }
 0x188   : >> { %v1253_v13 = vadd.f32 %v1992_v0, %v1246_v10  ;;  %v1846_v14 = vpop.f32.mrb[19].mxu0  ;;  %222 = sbr.rel (!%p220_p4) target bundleno = 17 (0x11), region = 91 }
 0x18a   : >> { %v1254_v15 = vmax.f32 %v1253_v13, 0.0 }
 0x18c   : >> { %v1255_v16 = vpack.c.bf16 %v1254_v15, %v1254_v15 }
 0x18e   : >> { %1257 = vst [vmem:[%s1256_s17] sm:$0x1] %v1255_v16 }
 0x18f PF: > { %s14_s15 = sadd.s32 1, %s1948_s15  }
 0x190   : > { %p11_p5 = scmp.ge.s32.totalorder %s14_s15, 4  }
 0x192   :  { %13 = sbr.rel (!%p11_p5) target bundleno = 1 (0x1), region = 102 }

</bundles_post_ra>
